<compile_context>
chip_gen: v7x
topology: tpu7x:2x2x1
jax: 0.10.0
libtpu: 0.0.40
codegen_flags: <defaults>
</compile_context>

<pallas_src>
import jax
import jax.numpy as jnp
from jax import lax
from jax.experimental import pallas as pl
from jax.experimental.pallas import tpu as pltpu


# ----------------------------------------------------------------------------
# Fused forward kernel (one batch tile of TB images per grid step)
# ----------------------------------------------------------------------------
def _alt_cnn_kernel(x_ref, m1_ref, b1_ref, m2_ref, b2_ref,
                    f1_ref, fb1_ref, w2_ref, fb2_ref, w3_ref, fb3_ref, o_ref):
    """Activation layout: rows = (height, batch), lanes = width*channels (channels fastest).
    Convs are shifted-slab matmuls against Toeplitz weights; pooling is a leading-dim
    pairwise add (the width/channel half of each pool is pre-folded into the next layer's
    weights); the NCHW flatten is pre-folded into fc1's weight rows.
    """
    f32, bf16 = jnp.float32, jnp.bfloat16
    TB = x_ref.shape[1]                                     # batch tile (multiple of 8)

    # ---- conv1 (1->8, k=5): ONE matmul over tap-concatenated lanes (K=140) ----
    xv = x_ref[...]                                         # (24, TB, 140) f32
    x2d = xv.reshape(24 * TB, 140).astype(bf16)             # rows = (h_out, b)
    acc1 = jnp.dot(x2d, m1_ref[...], preferred_element_type=f32)
    r1 = jnp.maximum(acc1 + b1_ref[...], 0.0)               # (24*TB, 24*8=192)

    # ---- pool1: height pairwise add (width/channel pool folded into conv2 w) --
    r1 = r1.reshape(12, 2, TB, 192)
    r1h = r1[:, 0] + r1[:, 1]                               # (12, TB, 192) f32

    # ---- conv2 (8->16, k=5): 5 shifted slabs, K=192 (pool1 fold), N=128 -------
    def c2_slab(di):
        return r1h[di:di + 8].reshape(8 * TB, 192).astype(bf16)

    acc2 = jnp.dot(c2_slab(0), m2_ref[0], preferred_element_type=f32)
    for di in range(1, 5):
        acc2 = acc2 + jnp.dot(c2_slab(di), m2_ref[di], preferred_element_type=f32)
    r3 = jnp.maximum(acc2 + b2_ref[...], 0.0)               # (8*TB, 8*16=128)

    # ---- pool2: height pairwise add (width/channel pool folded into fc1 w) ----
    r3 = r3.reshape(4, 2, TB, 128)
    r3h = r3[:, 0] + r3[:, 1]                               # (4, TB, 128) f32

    # ---- fc1 (256->120, padded to 128): pool2 + NCHW flatten folded in --------
    accf = jnp.dot(r3h[0].astype(bf16), f1_ref[0], preferred_element_type=f32)
    for h in range(1, 4):
        accf = accf + jnp.dot(r3h[h].astype(bf16), f1_ref[h],
                              preferred_element_type=f32)
    a1 = jnp.maximum(accf + fb1_ref[...], 0.0)              # (TB, 128), lanes>=120 are 0

    # ---- fc2 (120->84) + ReLU, fc3 (84->10), all lane dims padded to 128 ------
    a2 = jnp.maximum(
        jnp.dot(a1.astype(bf16), w2_ref[...], preferred_element_type=f32)
        + fb2_ref[...], 0.0)
    out = (jnp.dot(a2.astype(bf16), w3_ref[...], preferred_element_type=f32)
           + fb3_ref[...])
    o_ref[...] = out.astype(o_ref.dtype)                    # (TB, 128), unmasked store


# ----------------------------------------------------------------------------
# One-time parameter preparation (host/XLA, outside the hot path)
# ----------------------------------------------------------------------------
def prepare_params(params):
    """Transform PyTorch-layout weights into the kernel's structured operands."""
    f32, bf16 = jnp.float32, jnp.bfloat16
    w1 = params["conv1_w"].astype(f32)                      # (8, 1, 5, 5)
    w2 = params["conv2_w"].astype(f32)                      # (16, 8, 5, 5)

    # conv1 Toeplitz slabs: m1[di, w_in, j_out*8 + co] = w1[co, 0, di, w_in - j_out]
    dj = jnp.arange(5)[:, None, None]
    win1 = jnp.arange(28)[None, :, None]
    jout1 = jnp.arange(24)[None, None, :]
    t1 = (win1 == jout1 + dj).astype(f32)                   # (5, 28, 24)
    m1 = jnp.einsum('cde,ewj->dwjc', w1[:, 0], t1).reshape(5, 28, 24 * 8)
    # Tap-concatenated form: row index = di*28 + w_in (matches the (…,140) input lanes).
    m1c = m1.reshape(140, 192).astype(bf16)

    # conv2 Toeplitz slabs: m2[di, j_in*8 + ci, j_out*16 + co]
    win2 = jnp.arange(12)[None, :, None]
    jout2 = jnp.arange(8)[None, None, :]
    t2 = (win2 == jout2 + dj).astype(f32)                   # (5, 12, 8)
    m2 = jnp.einsum('abcd,dwj->cwbja', w2, t2).reshape(5, 12 * 8, 8 * 16)

    # pool1 width/channel matmul (0.25 folded) -> folded exactly into conv2 weights.
    p1 = 0.25 * jnp.kron(jnp.repeat(jnp.eye(12, dtype=f32), 2, axis=0),
                         jnp.eye(8, dtype=f32))             # (192, 96)
    m2f = jnp.einsum('kp,dpn->dkn', p1, m2).astype(bf16)    # (5, 192, 128)

    # pool2 width/channel matmul (0.25 folded) -> folded exactly into fc1 weights.
    p2 = 0.25 * jnp.kron(jnp.repeat(jnp.eye(4, dtype=f32), 2, axis=0),
                         jnp.eye(16, dtype=f32))            # (128, 64)

    # fc1: fold PyTorch's NCHW view(-1, 256) into a row permutation, then fold pool2,
    # then pad N 120 -> 128.
    f1 = (params["fc1_w"].astype(f32)
          .reshape(120, 16, 4, 4)          # (n, c, h, w)
          .transpose(2, 3, 1, 0)           # (h, w, c, n)
          .reshape(4, 64, 120))            # row index = w*16 + c
    f1p = jnp.zeros((4, 128, 128), f32).at[:, :, :120].set(
        jnp.einsum('kp,hpn->hkn', p2, f1)).astype(bf16)     # (4, 128, 128)

    # Biases (kept f32); conv biases broadcast along the packed (width, channel) lanes.
    b1r = jnp.tile(params["conv1_b"].astype(f32), 24)[None, :]   # (1, 192)
    b2r = jnp.tile(params["conv2_b"].astype(f32), 8)[None, :]    # (1, 128)
    fb1 = jnp.zeros((1, 128), f32).at[0, :120].set(params["fc1_b"].astype(f32))

    # fc2 / fc3: pad K and N to 128 lanes (zero rows/cols -> exact).
    w2p = jnp.zeros((128, 128), f32).at[:120, :84].set(
        params["fc2_w"].astype(f32).T).astype(bf16)
    fb2 = jnp.zeros((1, 128), f32).at[0, :84].set(params["fc2_b"].astype(f32))
    w3p = jnp.zeros((128, 128), f32).at[:84, :10].set(
        params["fc3_w"].astype(f32).T).astype(bf16)
    fb3 = jnp.zeros((1, 128), f32).at[0, :10].set(params["fc3_b"].astype(f32))

    return (m1c, b1r, m2f, b2r, f1p, fb1, w2p, fb2, w3p, fb3)


# ----------------------------------------------------------------------------
# Wrapper
# ----------------------------------------------------------------------------
def alternative_cnn_forward(prep, x_nchw, *, block_b=128):
    """x: (B, 1, 28, 28) f32 -> logits (B, 10) f32, one fused Pallas call."""
    (m1c, b1r, m2f, b2r, f1p, fb1, w2p, fb2, w3p, fb3) = prep
    B = x_nchw.shape[0]

    # Batch tile: multiple of 8 (sublane), clamped so tiny batches don't over-pad.
    block_b = max(8, (block_b // 8) * 8)
    block_b = min(block_b, ((B + 7) // 8) * 8)
    bp = ((B + block_b - 1) // block_b) * block_b

    # NCHW (B,1,28,28) -> (h_out, b, di*28 + w): 5 height-shifted copies concatenated
    # on the lane dim so conv1 becomes a single K=140 matmul.  (f32 in HBM keeps every
    # in-kernel reshape sublane-tile aligned for any TB multiple of 8.)
    x_hbw = jnp.transpose(x_nchw[:, 0, :, :], (1, 0, 2)).astype(jnp.float32)  # (28,B,28)
    x_taps = jnp.concatenate([x_hbw[di:di + 24] for di in range(5)], axis=-1)  # (24,B,140)
    if bp != B:
        x_taps = jnp.pad(x_taps, ((0, 0), (0, bp - B), (0, 0)))

    c2 = lambda i: (0, 0)          # small 2-D weights: resident, fetched once
    c3 = lambda i: (0, 0, 0)       # stacked 3-D weights

    out = pl.pallas_call(
        _alt_cnn_kernel,
        out_shape=jax.ShapeDtypeStruct((bp, 128), jnp.float32),
        grid=(bp // block_b,),
        in_specs=[
            pl.BlockSpec((24, block_b, 140), lambda i: (0, i, 0)),  # input batch tile
            pl.BlockSpec(m1c.shape, c2),
            pl.BlockSpec(b1r.shape, c2),
            pl.BlockSpec(m2f.shape, c3),
            pl.BlockSpec(b2r.shape, c2),
            pl.BlockSpec(f1p.shape, c3),
            pl.BlockSpec(fb1.shape, c2),
            pl.BlockSpec(w2p.shape, c2),
            pl.BlockSpec(fb2.shape, c2),
            pl.BlockSpec(w3p.shape, c2),
            pl.BlockSpec(fb3.shape, c2),
        ],
        out_specs=pl.BlockSpec((block_b, 128), lambda i: (i, 0)),
        compiler_params=pltpu.CompilerParams(
            dimension_semantics=("parallel",),      # shard batch tiles across TCs (v7x)
            vmem_limit_bytes=48 * 1024 * 1024),     # safe on v7x (64 MiB), ample elsewhere
    )(x_taps, m1c, b1r, m2f, b2r, f1p, fb1, w2p, fb2, w3p, fb3)

    return out[:B, :10]


# ----------------------------------------------------------------------------
# Parameter init (same shapes as AlternativeCNN.__init__) and pure-JAX reference
# ----------------------------------------------------------------------------
def init_params(key):
    ks = jax.random.split(key, 10)

    def uni(k, shape, fan_in):
        bound = 1.0 / jnp.sqrt(fan_in)
        return jax.random.uniform(k, shape, jnp.float32, -bound, bound)

    return {
        "conv1_w": uni(ks[0], (8, 1, 5, 5), 1 * 5 * 5),
        "conv1_b": uni(ks[1], (8,), 1 * 5 * 5),
        "conv2_w": uni(ks[2], (16, 8, 5, 5), 8 * 5 * 5),
        "conv2_b": uni(ks[3], (16,), 8 * 5 * 5),
        "fc1_w": uni(ks[4], (120, 256), 256),
        "fc1_b": uni(ks[5], (120,), 256),
        "fc2_w": uni(ks[6], (84, 120), 120),
        "fc2_b": uni(ks[7], (84,), 120),
        "fc3_w": uni(ks[8], (10, 84), 84),
        "fc3_b": uni(ks[9], (10,), 84),
    }


def _reference_forward(params, x):
    """Pure-JAX replica of the PyTorch module (validation only)."""
    def conv(a, w, b):
        y = lax.conv_general_dilated(a, w, (1, 1), "VALID",
                                     dimension_numbers=("NCHW", "OIHW", "NCHW"))
        return jnp.maximum(y + b[None, :, None, None], 0.0)

    def pool(a):
        B, C, H, W = a.shape
        return a.reshape(B, C, H // 2, 2, W // 2, 2).mean(axis=(3, 5))

    y = pool(conv(x, params["conv1_w"], params["conv1_b"]))
    y = pool(conv(y, params["conv2_w"], params["conv2_b"]))
    y = y.reshape(y.shape[0], -1)
    y = jnp.maximum(y @ params["fc1_w"].T + params["fc1_b"], 0.0)
    y = jnp.maximum(y @ params["fc2_w"].T + params["fc2_b"], 0.0)
    return y @ params["fc3_w"].T + params["fc3_b"]


if __name__ == "__main__":
    key = jax.random.PRNGKey(0)
    pkey, xkey = jax.random.split(key)
    params = init_params(pkey)
    prep = prepare_params(params)

    # MNIST-shaped input implied by fc1 (16*4*4 = 256): (B, 1, 28, 28)
    x = jax.random.normal(xkey, (2, 1, 28, 28), dtype=jnp.float32)

    logits = jax.jit(alternative_cnn_forward)(prep, x)
    jax.block_until_ready(logits)
    assert logits.shape == (2, 10) and logits.dtype == jnp.float32

    # Sanity check against a pure-JAX f32 reference (loose tol for bf16 MXU operands).
    ref = jax.jit(_reference_forward)(params, x)
    max_err = float(jnp.max(jnp.abs(logits - ref)))
    assert max_err < 5e-2, f"mismatch vs reference: max_err={max_err}"

    print("KERNEL_OK")
</pallas_src>

<mosaic_0001>
module attributes {stable_mosaic.version = 11 : i64} {
  func.func @_alt_cnn_kernel(%arg0: i32, %arg1: memref<24x8x140xf32, #tpu.memory_space<vmem>>, %arg2: memref<140x192xbf16, #tpu.memory_space<vmem>>, %arg3: memref<1x192xf32, #tpu.memory_space<vmem>>, %arg4: memref<5x192x128xbf16, #tpu.memory_space<vmem>>, %arg5: memref<1x128xf32, #tpu.memory_space<vmem>>, %arg6: memref<4x128x128xbf16, #tpu.memory_space<vmem>>, %arg7: memref<1x128xf32, #tpu.memory_space<vmem>>, %arg8: memref<128x128xbf16, #tpu.memory_space<vmem>>, %arg9: memref<1x128xf32, #tpu.memory_space<vmem>>, %arg10: memref<128x128xbf16, #tpu.memory_space<vmem>>, %arg11: memref<1x128xf32, #tpu.memory_space<vmem>>, %arg12: memref<8x128xf32, #tpu.memory_space<vmem>>) attributes {dimension_semantics = [#tpu.dimension_semantics<parallel>], iteration_bounds = array<i64: 1>, scalar_prefetch = 0 : i64, scratch_operands = 0 : i64, tpu.core_type = #tpu.core_type<tc>, window_params = [{transform_indices = @transform_0, window_bounds = array<i64: 24, 8, 140>}, {pipeline_mode = #tpu.pipeline_mode<synchronous>, transform_indices = @transform_1, window_bounds = array<i64: 140, 192>}, {pipeline_mode = #tpu.pipeline_mode<synchronous>, transform_indices = @transform_2, window_bounds = array<i64: 1, 192>}, {pipeline_mode = #tpu.pipeline_mode<synchronous>, transform_indices = @transform_3, window_bounds = array<i64: 5, 192, 128>}, {pipeline_mode = #tpu.pipeline_mode<synchronous>, transform_indices = @transform_4, window_bounds = array<i64: 1, 128>}, {pipeline_mode = #tpu.pipeline_mode<synchronous>, transform_indices = @transform_5, window_bounds = array<i64: 4, 128, 128>}, {pipeline_mode = #tpu.pipeline_mode<synchronous>, transform_indices = @transform_6, window_bounds = array<i64: 1, 128>}, {pipeline_mode = #tpu.pipeline_mode<synchronous>, transform_indices = @transform_7, window_bounds = array<i64: 128, 128>}, {pipeline_mode = #tpu.pipeline_mode<synchronous>, transform_indices = @transform_8, window_bounds = array<i64: 1, 128>}, {pipeline_mode = #tpu.pipeline_mode<synchronous>, transform_indices = @transform_9, window_bounds = array<i64: 128, 128>}, {pipeline_mode = #tpu.pipeline_mode<synchronous>, transform_indices = @transform_10, window_bounds = array<i64: 1, 128>}, {transform_indices = @transform_11, window_bounds = array<i64: 8, 128>}]} {
    %c0 = arith.constant 0 : index
    %c0_0 = arith.constant 0 : index
    %c0_1 = arith.constant 0 : index
    %0 = vector.load %arg1[%c0, %c0_0, %c0_1] : memref<24x8x140xf32, #tpu.memory_space<vmem>>, vector<24x8x140xf32>
    %1 = vector.shape_cast %0 : vector<24x8x140xf32> to vector<192x140xf32>
    %2 = arith.truncf %1 : vector<192x140xf32> to vector<192x140xbf16>
    %c0_2 = arith.constant 0 : index
    %c0_3 = arith.constant 0 : index
    %3 = vector.load %arg2[%c0_2, %c0_3] : memref<140x192xbf16, #tpu.memory_space<vmem>>, vector<140x192xbf16>
    %cst = arith.constant dense<0.000000e+00> : vector<192x192xf32>
    %4 = tpu.matmul %2, %3, %cst {dimension_numbers = #tpu.dot_dimension_numbers<[1], [0], [0], [1], [0, 0, 1, 1], [], []>} : vector<192x140xbf16>, vector<140x192xbf16>, vector<192x192xf32> -> vector<192x192xf32>
    %c0_4 = arith.constant 0 : index
    %c0_5 = arith.constant 0 : index
    %5 = vector.load %arg3[%c0_4, %c0_5] : memref<1x192xf32, #tpu.memory_space<vmem>>, vector<1x192xf32>
    %6 = vector.broadcast %5 : vector<1x192xf32> to vector<192x192xf32>
    %7 = arith.addf %4, %6 : vector<192x192xf32>
    %cst_6 = arith.constant 0.000000e+00 : f32
    %8 = vector.broadcast %cst_6 : f32 to vector<192x192xf32>
    %9 = arith.maximumf %7, %8 : vector<192x192xf32>
    %10 = vector.shape_cast %9 : vector<192x192xf32> to vector<12x2x8x192xf32>
    %11 = vector.extract_strided_slice %10 {offsets = [0, 0, 0, 0], sizes = [12, 1, 8, 192], strides = [1, 1, 1, 1]} : vector<12x2x8x192xf32> to vector<12x1x8x192xf32>
    %12 = vector.shape_cast %11 : vector<12x1x8x192xf32> to vector<12x8x192xf32>
    %13 = vector.extract_strided_slice %10 {offsets = [0, 1, 0, 0], sizes = [12, 1, 8, 192], strides = [1, 1, 1, 1]} : vector<12x2x8x192xf32> to vector<12x1x8x192xf32>
    %14 = vector.shape_cast %13 : vector<12x1x8x192xf32> to vector<12x8x192xf32>
    %15 = arith.addf %12, %14 : vector<12x8x192xf32>
    %16 = vector.extract_strided_slice %15 {offsets = [0, 0, 0], sizes = [8, 8, 192], strides = [1, 1, 1]} : vector<12x8x192xf32> to vector<8x8x192xf32>
    %17 = vector.shape_cast %16 : vector<8x8x192xf32> to vector<64x192xf32>
    %18 = arith.truncf %17 : vector<64x192xf32> to vector<64x192xbf16>
    %c0_7 = arith.constant 0 : index
    %c0_8 = arith.constant 0 : index
    %c0_9 = arith.constant 0 : index
    %19 = vector.load %arg4[%c0_7, %c0_8, %c0_9] : memref<5x192x128xbf16, #tpu.memory_space<vmem>>, vector<1x192x128xbf16>
    %20 = vector.shape_cast %19 : vector<1x192x128xbf16> to vector<192x128xbf16>
    %cst_10 = arith.constant dense<0.000000e+00> : vector<64x128xf32>
    %21 = tpu.matmul %18, %20, %cst_10 {dimension_numbers = #tpu.dot_dimension_numbers<[1], [0], [0], [1], [0, 0, 1, 1], [], []>} : vector<64x192xbf16>, vector<192x128xbf16>, vector<64x128xf32> -> vector<64x128xf32>
    %22 = vector.extract_strided_slice %15 {offsets = [1, 0, 0], sizes = [8, 8, 192], strides = [1, 1, 1]} : vector<12x8x192xf32> to vector<8x8x192xf32>
    %23 = vector.shape_cast %22 : vector<8x8x192xf32> to vector<64x192xf32>
    %24 = arith.truncf %23 : vector<64x192xf32> to vector<64x192xbf16>
    %c1 = arith.constant 1 : index
    %c0_11 = arith.constant 0 : index
    %c0_12 = arith.constant 0 : index
    %25 = vector.load %arg4[%c1, %c0_11, %c0_12] : memref<5x192x128xbf16, #tpu.memory_space<vmem>>, vector<1x192x128xbf16>
    %26 = vector.shape_cast %25 : vector<1x192x128xbf16> to vector<192x128xbf16>
    %cst_13 = arith.constant dense<0.000000e+00> : vector<64x128xf32>
    %27 = tpu.matmul %24, %26, %cst_13 {dimension_numbers = #tpu.dot_dimension_numbers<[1], [0], [0], [1], [0, 0, 1, 1], [], []>} : vector<64x192xbf16>, vector<192x128xbf16>, vector<64x128xf32> -> vector<64x128xf32>
    %28 = arith.addf %21, %27 : vector<64x128xf32>
    %29 = vector.extract_strided_slice %15 {offsets = [2, 0, 0], sizes = [8, 8, 192], strides = [1, 1, 1]} : vector<12x8x192xf32> to vector<8x8x192xf32>
    %30 = vector.shape_cast %29 : vector<8x8x192xf32> to vector<64x192xf32>
    %31 = arith.truncf %30 : vector<64x192xf32> to vector<64x192xbf16>
    %c2 = arith.constant 2 : index
    %c0_14 = arith.constant 0 : index
    %c0_15 = arith.constant 0 : index
    %32 = vector.load %arg4[%c2, %c0_14, %c0_15] : memref<5x192x128xbf16, #tpu.memory_space<vmem>>, vector<1x192x128xbf16>
    %33 = vector.shape_cast %32 : vector<1x192x128xbf16> to vector<192x128xbf16>
    %cst_16 = arith.constant dense<0.000000e+00> : vector<64x128xf32>
    %34 = tpu.matmul %31, %33, %cst_16 {dimension_numbers = #tpu.dot_dimension_numbers<[1], [0], [0], [1], [0, 0, 1, 1], [], []>} : vector<64x192xbf16>, vector<192x128xbf16>, vector<64x128xf32> -> vector<64x128xf32>
    %35 = arith.addf %28, %34 : vector<64x128xf32>
    %36 = vector.extract_strided_slice %15 {offsets = [3, 0, 0], sizes = [8, 8, 192], strides = [1, 1, 1]} : vector<12x8x192xf32> to vector<8x8x192xf32>
    %37 = vector.shape_cast %36 : vector<8x8x192xf32> to vector<64x192xf32>
    %38 = arith.truncf %37 : vector<64x192xf32> to vector<64x192xbf16>
    %c3 = arith.constant 3 : index
    %c0_17 = arith.constant 0 : index
    %c0_18 = arith.constant 0 : index
    %39 = vector.load %arg4[%c3, %c0_17, %c0_18] : memref<5x192x128xbf16, #tpu.memory_space<vmem>>, vector<1x192x128xbf16>
    %40 = vector.shape_cast %39 : vector<1x192x128xbf16> to vector<192x128xbf16>
    %cst_19 = arith.constant dense<0.000000e+00> : vector<64x128xf32>
    %41 = tpu.matmul %38, %40, %cst_19 {dimension_numbers = #tpu.dot_dimension_numbers<[1], [0], [0], [1], [0, 0, 1, 1], [], []>} : vector<64x192xbf16>, vector<192x128xbf16>, vector<64x128xf32> -> vector<64x128xf32>
    %42 = arith.addf %35, %41 : vector<64x128xf32>
    %43 = vector.extract_strided_slice %15 {offsets = [4, 0, 0], sizes = [8, 8, 192], strides = [1, 1, 1]} : vector<12x8x192xf32> to vector<8x8x192xf32>
    %44 = vector.shape_cast %43 : vector<8x8x192xf32> to vector<64x192xf32>
    %45 = arith.truncf %44 : vector<64x192xf32> to vector<64x192xbf16>
    %c4 = arith.constant 4 : index
    %c0_20 = arith.constant 0 : index
    %c0_21 = arith.constant 0 : index
    %46 = vector.load %arg4[%c4, %c0_20, %c0_21] : memref<5x192x128xbf16, #tpu.memory_space<vmem>>, vector<1x192x128xbf16>
    %47 = vector.shape_cast %46 : vector<1x192x128xbf16> to vector<192x128xbf16>
    %cst_22 = arith.constant dense<0.000000e+00> : vector<64x128xf32>
    %48 = tpu.matmul %45, %47, %cst_22 {dimension_numbers = #tpu.dot_dimension_numbers<[1], [0], [0], [1], [0, 0, 1, 1], [], []>} : vector<64x192xbf16>, vector<192x128xbf16>, vector<64x128xf32> -> vector<64x128xf32>
    %49 = arith.addf %42, %48 : vector<64x128xf32>
    %c0_23 = arith.constant 0 : index
    %c0_24 = arith.constant 0 : index
    %50 = vector.load %arg5[%c0_23, %c0_24] : memref<1x128xf32, #tpu.memory_space<vmem>>, vector<1x128xf32>
    %51 = vector.broadcast %50 : vector<1x128xf32> to vector<64x128xf32>
    %52 = arith.addf %49, %51 : vector<64x128xf32>
    %cst_25 = arith.constant 0.000000e+00 : f32
    %53 = vector.broadcast %cst_25 : f32 to vector<64x128xf32>
    %54 = arith.maximumf %52, %53 : vector<64x128xf32>
    %55 = vector.shape_cast %54 : vector<64x128xf32> to vector<4x2x8x128xf32>
    %56 = vector.extract_strided_slice %55 {offsets = [0, 0, 0, 0], sizes = [4, 1, 8, 128], strides = [1, 1, 1, 1]} : vector<4x2x8x128xf32> to vector<4x1x8x128xf32>
    %57 = vector.shape_cast %56 : vector<4x1x8x128xf32> to vector<4x8x128xf32>
    %58 = vector.extract_strided_slice %55 {offsets = [0, 1, 0, 0], sizes = [4, 1, 8, 128], strides = [1, 1, 1, 1]} : vector<4x2x8x128xf32> to vector<4x1x8x128xf32>
    %59 = vector.shape_cast %58 : vector<4x1x8x128xf32> to vector<4x8x128xf32>
    %60 = arith.addf %57, %59 : vector<4x8x128xf32>
    %61 = vector.extract_strided_slice %60 {offsets = [0, 0, 0], sizes = [1, 8, 128], strides = [1, 1, 1]} : vector<4x8x128xf32> to vector<1x8x128xf32>
    %62 = vector.shape_cast %61 : vector<1x8x128xf32> to vector<8x128xf32>
    %63 = arith.truncf %62 : vector<8x128xf32> to vector<8x128xbf16>
    %c0_26 = arith.constant 0 : index
    %c0_27 = arith.constant 0 : index
    %c0_28 = arith.constant 0 : index
    %64 = vector.load %arg6[%c0_26, %c0_27, %c0_28] : memref<4x128x128xbf16, #tpu.memory_space<vmem>>, vector<1x128x128xbf16>
    %65 = vector.shape_cast %64 : vector<1x128x128xbf16> to vector<128x128xbf16>
    %cst_29 = arith.constant dense<0.000000e+00> : vector<8x128xf32>
    %66 = tpu.matmul %63, %65, %cst_29 {dimension_numbers = #tpu.dot_dimension_numbers<[1], [0], [0], [1], [0, 0, 1, 1], [], []>} : vector<8x128xbf16>, vector<128x128xbf16>, vector<8x128xf32> -> vector<8x128xf32>
    %67 = vector.extract_strided_slice %60 {offsets = [1, 0, 0], sizes = [1, 8, 128], strides = [1, 1, 1]} : vector<4x8x128xf32> to vector<1x8x128xf32>
    %68 = vector.shape_cast %67 : vector<1x8x128xf32> to vector<8x128xf32>
    %69 = arith.truncf %68 : vector<8x128xf32> to vector<8x128xbf16>
    %c1_30 = arith.constant 1 : index
    %c0_31 = arith.constant 0 : index
    %c0_32 = arith.constant 0 : index
    %70 = vector.load %arg6[%c1_30, %c0_31, %c0_32] : memref<4x128x128xbf16, #tpu.memory_space<vmem>>, vector<1x128x128xbf16>
    %71 = vector.shape_cast %70 : vector<1x128x128xbf16> to vector<128x128xbf16>
    %cst_33 = arith.constant dense<0.000000e+00> : vector<8x128xf32>
    %72 = tpu.matmul %69, %71, %cst_33 {dimension_numbers = #tpu.dot_dimension_numbers<[1], [0], [0], [1], [0, 0, 1, 1], [], []>} : vector<8x128xbf16>, vector<128x128xbf16>, vector<8x128xf32> -> vector<8x128xf32>
    %73 = arith.addf %66, %72 : vector<8x128xf32>
    %74 = vector.extract_strided_slice %60 {offsets = [2, 0, 0], sizes = [1, 8, 128], strides = [1, 1, 1]} : vector<4x8x128xf32> to vector<1x8x128xf32>
    %75 = vector.shape_cast %74 : vector<1x8x128xf32> to vector<8x128xf32>
    %76 = arith.truncf %75 : vector<8x128xf32> to vector<8x128xbf16>
    %c2_34 = arith.constant 2 : index
    %c0_35 = arith.constant 0 : index
    %c0_36 = arith.constant 0 : index
    %77 = vector.load %arg6[%c2_34, %c0_35, %c0_36] : memref<4x128x128xbf16, #tpu.memory_space<vmem>>, vector<1x128x128xbf16>
    %78 = vector.shape_cast %77 : vector<1x128x128xbf16> to vector<128x128xbf16>
    %cst_37 = arith.constant dense<0.000000e+00> : vector<8x128xf32>
    %79 = tpu.matmul %76, %78, %cst_37 {dimension_numbers = #tpu.dot_dimension_numbers<[1], [0], [0], [1], [0, 0, 1, 1], [], []>} : vector<8x128xbf16>, vector<128x128xbf16>, vector<8x128xf32> -> vector<8x128xf32>
    %80 = arith.addf %73, %79 : vector<8x128xf32>
    %81 = vector.extract_strided_slice %60 {offsets = [3, 0, 0], sizes = [1, 8, 128], strides = [1, 1, 1]} : vector<4x8x128xf32> to vector<1x8x128xf32>
    %82 = vector.shape_cast %81 : vector<1x8x128xf32> to vector<8x128xf32>
    %83 = arith.truncf %82 : vector<8x128xf32> to vector<8x128xbf16>
    %c3_38 = arith.constant 3 : index
    %c0_39 = arith.constant 0 : index
    %c0_40 = arith.constant 0 : index
    %84 = vector.load %arg6[%c3_38, %c0_39, %c0_40] : memref<4x128x128xbf16, #tpu.memory_space<vmem>>, vector<1x128x128xbf16>
    %85 = vector.shape_cast %84 : vector<1x128x128xbf16> to vector<128x128xbf16>
    %cst_41 = arith.constant dense<0.000000e+00> : vector<8x128xf32>
    %86 = tpu.matmul %83, %85, %cst_41 {dimension_numbers = #tpu.dot_dimension_numbers<[1], [0], [0], [1], [0, 0, 1, 1], [], []>} : vector<8x128xbf16>, vector<128x128xbf16>, vector<8x128xf32> -> vector<8x128xf32>
    %87 = arith.addf %80, %86 : vector<8x128xf32>
    %c0_42 = arith.constant 0 : index
    %c0_43 = arith.constant 0 : index
    %88 = vector.load %arg7[%c0_42, %c0_43] : memref<1x128xf32, #tpu.memory_space<vmem>>, vector<1x128xf32>
    %89 = vector.broadcast %88 : vector<1x128xf32> to vector<8x128xf32>
    %90 = arith.addf %87, %89 : vector<8x128xf32>
    %cst_44 = arith.constant 0.000000e+00 : f32
    %91 = vector.broadcast %cst_44 : f32 to vector<8x128xf32>
    %92 = arith.maximumf %90, %91 : vector<8x128xf32>
    %93 = arith.truncf %92 : vector<8x128xf32> to vector<8x128xbf16>
    %c0_45 = arith.constant 0 : index
    %c0_46 = arith.constant 0 : index
    %94 = vector.load %arg8[%c0_45, %c0_46] : memref<128x128xbf16, #tpu.memory_space<vmem>>, vector<128x128xbf16>
    %cst_47 = arith.constant dense<0.000000e+00> : vector<8x128xf32>
    %95 = tpu.matmul %93, %94, %cst_47 {dimension_numbers = #tpu.dot_dimension_numbers<[1], [0], [0], [1], [0, 0, 1, 1], [], []>} : vector<8x128xbf16>, vector<128x128xbf16>, vector<8x128xf32> -> vector<8x128xf32>
    %c0_48 = arith.constant 0 : index
    %c0_49 = arith.constant 0 : index
    %96 = vector.load %arg9[%c0_48, %c0_49] : memref<1x128xf32, #tpu.memory_space<vmem>>, vector<1x128xf32>
    %97 = vector.broadcast %96 : vector<1x128xf32> to vector<8x128xf32>
    %98 = arith.addf %95, %97 : vector<8x128xf32>
    %cst_50 = arith.constant 0.000000e+00 : f32
    %99 = vector.broadcast %cst_50 : f32 to vector<8x128xf32>
    %100 = arith.maximumf %98, %99 : vector<8x128xf32>
    %101 = arith.truncf %100 : vector<8x128xf32> to vector<8x128xbf16>
    %c0_51 = arith.constant 0 : index
    %c0_52 = arith.constant 0 : index
    %102 = vector.load %arg10[%c0_51, %c0_52] : memref<128x128xbf16, #tpu.memory_space<vmem>>, vector<128x128xbf16>
    %cst_53 = arith.constant dense<0.000000e+00> : vector<8x128xf32>
    %103 = tpu.matmul %101, %102, %cst_53 {dimension_numbers = #tpu.dot_dimension_numbers<[1], [0], [0], [1], [0, 0, 1, 1], [], []>} : vector<8x128xbf16>, vector<128x128xbf16>, vector<8x128xf32> -> vector<8x128xf32>
    %c0_54 = arith.constant 0 : index
    %c0_55 = arith.constant 0 : index
    %104 = vector.load %arg11[%c0_54, %c0_55] : memref<1x128xf32, #tpu.memory_space<vmem>>, vector<1x128xf32>
    %105 = vector.broadcast %104 : vector<1x128xf32> to vector<8x128xf32>
    %106 = arith.addf %103, %105 : vector<8x128xf32>
    %c0_56 = arith.constant 0 : index
    %c0_57 = arith.constant 0 : index
    %107 = vector.load %arg12[%c0_56, %c0_57] : memref<8x128xf32, #tpu.memory_space<vmem>>, vector<8x128xf32>
    tpu.vector_store %arg12[%c0_56, %c0_57], %106 {strides = array<i32>} : memref<8x128xf32, #tpu.memory_space<vmem>>, vector<8x128xf32>,
    return
  }
  func.func @transform_0(%arg0: i32) -> (i32, i32, i32) {
    %c0_i32 = arith.constant 0 : i32
    %c0_i32_0 = arith.constant 0 : i32
    %c0_i32_1 = arith.constant 0 : i32
    return %c0_i32, %arg0, %c0_i32_0 : i32, i32, i32
  }
  func.func @transform_1(%arg0: i32) -> (i32, i32) {
    %c0_i32 = arith.constant 0 : i32
    %c0_i32_0 = arith.constant 0 : i32
    %c0_i32_1 = arith.constant 0 : i32
    return %c0_i32, %c0_i32_0 : i32, i32
  }
  func.func @transform_2(%arg0: i32) -> (i32, i32) {
    %c0_i32 = arith.constant 0 : i32
    %c0_i32_0 = arith.constant 0 : i32
    %c0_i32_1 = arith.constant 0 : i32
    return %c0_i32, %c0_i32_0 : i32, i32
  }
  func.func @transform_3(%arg0: i32) -> (i32, i32, i32) {
    %c0_i32 = arith.constant 0 : i32
    %c0_i32_0 = arith.constant 0 : i32
    %c0_i32_1 = arith.constant 0 : i32
    %c0_i32_2 = arith.constant 0 : i32
    return %c0_i32, %c0_i32_0, %c0_i32_1 : i32, i32, i32
  }
  func.func @transform_4(%arg0: i32) -> (i32, i32) {
    %c0_i32 = arith.constant 0 : i32
    %c0_i32_0 = arith.constant 0 : i32
    %c0_i32_1 = arith.constant 0 : i32
    return %c0_i32, %c0_i32_0 : i32, i32
  }
  func.func @transform_5(%arg0: i32) -> (i32, i32, i32) {
    %c0_i32 = arith.constant 0 : i32
    %c0_i32_0 = arith.constant 0 : i32
    %c0_i32_1 = arith.constant 0 : i32
    %c0_i32_2 = arith.constant 0 : i32
    return %c0_i32, %c0_i32_0, %c0_i32_1 : i32, i32, i32
  }
  func.func @transform_6(%arg0: i32) -> (i32, i32) {
    %c0_i32 = arith.constant 0 : i32
    %c0_i32_0 = arith.constant 0 : i32
    %c0_i32_1 = arith.constant 0 : i32
    return %c0_i32, %c0_i32_0 : i32, i32
  }
  func.func @transform_7(%arg0: i32) -> (i32, i32) {
    %c0_i32 = arith.constant 0 : i32
    %c0_i32_0 = arith.constant 0 : i32
    %c0_i32_1 = arith.constant 0 : i32
    return %c0_i32, %c0_i32_0 : i32, i32
  }
  func.func @transform_8(%arg0: i32) -> (i32, i32) {
    %c0_i32 = arith.constant 0 : i32
    %c0_i32_0 = arith.constant 0 : i32
    %c0_i32_1 = arith.constant 0 : i32
    return %c0_i32, %c0_i32_0 : i32, i32
  }
  func.func @transform_9(%arg0: i32) -> (i32, i32) {
    %c0_i32 = arith.constant 0 : i32
    %c0_i32_0 = arith.constant 0 : i32
    %c0_i32_1 = arith.constant 0 : i32
    return %c0_i32, %c0_i32_0 : i32, i32
  }
  func.func @transform_10(%arg0: i32) -> (i32, i32) {
    %c0_i32 = arith.constant 0 : i32
    %c0_i32_0 = arith.constant 0 : i32
    %c0_i32_1 = arith.constant 0 : i32
    return %c0_i32, %c0_i32_0 : i32, i32
  }
  func.func @transform_11(%arg0: i32) -> (i32, i32) {
    %c0_i32 = arith.constant 0 : i32
    %c0_i32_0 = arith.constant 0 : i32
    return %arg0, %c0_i32 : i32, i32
  }
}

</mosaic_0001>

<bundles_post_ra>
// kernel: alternative_cnn_forward.1
= control target key start
LH: loop header
LB: loop body
LE: loop exit
PB: predicated region body
PF: predicated region fallthrough
CT: control target
= control target key end

     0   :  { %v2697_v1 = vmov 0   ;;  %vm229_vm0 = vcmask 97280   ;;  %vm266_vm1 = vcmask 1045504   ;;  %vm635_vm2 = vcmask 523264   ;;  %s3603_s1 = inlined_call_operand.vmem [shape: bf16[140,192], index: 1, kind: input, shape index: {}]   ;;  %s3604_s0 = inlined_call_operand.vmem [shape: f32[24,8,140], index: 0, kind: input, shape index: {}]   ;;  %s3605_s3 = inlined_call_operand.vmem [shape: bf16[5,192,128], index: 3, kind: input, shape index: {}]   ;;  %s3606_s2 = inlined_call_operand.vmem [shape: f32[1,192], index: 2, kind: input, shape index: {}]   ;;  %s3607_s5 = inlined_call_operand.vmem [shape: bf16[4,128,128], index: 5, kind: input, shape index: {}]   ;;  %s3608_s4 = inlined_call_operand.vmem [shape: f32[1,128], index: 4, kind: input, shape index: {}]   ;;  %s3609_s7 = inlined_call_operand.vmem [shape: bf16[128,128], index: 7, kind: input, shape index: {}]   ;;  %s3610_s9 = inlined_call_operand.vmem [shape: bf16[128,128], index: 9, kind: input, shape index: {}]   ;;  %s3611_s6 = inlined_call_operand.vmem [shape: f32[1,128], index: 6, kind: input, shape index: {}]   ;;  %s3612_s8 = inlined_call_operand.vmem [shape: f32[1,128], index: 8, kind: input, shape index: {}]   ;;  %s3613_s10 = inlined_call_operand.vmem [shape: f32[1,128], index: 10, kind: input, shape index: {}]   ;;  %s3614_s11 = inlined_call_operand.vmem [shape: f32[8,128], index: 11, kind: output, shape index: {}]  }
   0x1   :  { %v2562_v0 = vld [vmem:[%s3603_s1 + $0x4] ss:$8 sps:$4 sm:$0xff]   ;;  %648 = vmatprep.subr.bf16.mxu1 %v2697_v1  ;;  %v2564_v2 = vld [vmem:[%s3603_s1] ss:$8 sps:$4 sm:$0xff]   ;;  %v2565_v3 = vld [vmem:[%s3603_s1 + $0x14] ss:$8 sps:$4 sm:$0xff]  }
   0x2   :  { %273 = vmatprep.subr.bf16.mxu0 %v2562_v0  ;;  %v2567_v4 = vld [vmem:[%s3603_s1 + $0x10] ss:$8 sps:$4 sm:$0xff]   ;;  %v2568_v5 = vld [vmem:[%s3603_s1 + $0x24] ss:$8 sps:$4 sm:$0xff]   ;;  %v2570_v6 = vld [vmem:[%s3603_s1 + $0x20] ss:$8 sps:$4 sm:$0xff]  }
   0x3   :  { %274 = vmatpush1.bf16.msra.mxu0 %v2564_v2  ;;  %v2571_v7 = vld [vmem:[%s3603_s1 + $0x34] ss:$8 sps:$4 sm:$0xff]   ;;  %v2573_v8 = vld [vmem:[%s3603_s1 + $0x30] ss:$8 sps:$4 sm:$0xff]   ;;  %v40_v9 = vld [vmem:[%s3604_s0 + $0x8] sm:$0xff]  ;;  %vm2699_vm3 = vmmov 0  }
   0x4   :  { %275 = vmatprep.subr.bf16.mxu0 %v2565_v3  ;;  %v2574_v10 = vld [vmem:[%s3603_s1 + $0x44] ss:$8 sps:$4 sm:$0xff]   ;;  %v42_v11 = vld [vmem:[%s3604_s0 + $0x18] sm:$0xff]  ;;  %v2576_v13 = vld [vmem:[%s3603_s1 + $0x40] ss:$8 sps:$4 sm:$0xff]  }
   0x5   :  { %v88_v12 = vpack.c.bf16 %v42_v11, %v40_v9  ;;  %v2577_v14 = vld [vmem:[%s3603_s1 + $0x54] ss:$8 sps:$4 sm:$0xff]   ;;  %v2579_v15 = vld [vmem:[%s3603_s1 + $0x50] ss:$8 sps:$4 sm:$0xff]   ;;  %v2580_v16 = vld [vmem:[%s3603_s1 + $0x64] ss:$8 sps:$4 sm:$0xff]  }
   0x6   :  { %v2582_v17 = vld [vmem:[%s3603_s1 + $0x60] ss:$8 sps:$4 sm:$0xff]   ;;  %v2583_v18 = vld [vmem:[%s3603_s1 + $0x74] ss:$8 sps:$4 sm:$0xff]   ;;  %v2585_v19 = vld [vmem:[%s3603_s1 + $0x70] ss:$8 sps:$4 sm:$0xff]  }
   0x7   :  { %276 = vmatpush1.bf16.msra.mxu0 %v2567_v4  ;;  %2097 = vmatprep.mubr.msk.bf16.mxu0 %vm229_vm0, %v88_v12  ;;  %v2586_v20 = vld [vmem:[%s3603_s1 + $0x84] ss:$8 sps:$4 sm:$0x3f]   ;;  %v2588_v21 = vld [vmem:[%s3603_s1 + $0x80] ss:$8 sps:$4 sm:$0x3f]  }
   0x8   :  { %277 = vmatprep.subr.bf16.mxu0 %v2568_v5  ;;  %v2589_v22 = vld [vmem:[%s3605_s3 + $0x60] sm:$0xff]   ;;  %v41_v24 = vld [vmem:[%s3604_s0 + $0x10] sm:$0xff]  ;;  %v2590_v25 = vld [vmem:[%s3605_s3 + $0x68] sm:$0xff]   ;;  %v268_v27 = vsel %vm266_vm1, %v2588_v21, 0 }
   0x9   :  { %v39_v23 = vld [vmem:[%s3604_s0] sm:$0xff]  ;;  %649 = vmatpush1.bf16.msra.mxu1 %v2589_v22  ;;  %v44_v26 = vld [vmem:[%s3604_s0 + $0x28] sm:$0xff]  ;;  %v46_v28 = vld [vmem:[%s3604_s0 + $0x38] sm:$0xff] }
   0xa   :  { %650 = vmatprep.subr.bf16.mxu1 %v2697_v1  ;;  %v87_v29 = vpack.c.bf16 %v41_v24, %v39_v23  ;;  %v2591_v30 = vld [vmem:[%s3605_s3 + $0x70] sm:$0xff]   ;;  %v90_v31 = vpack.c.bf16 %v46_v28, %v44_v26  ;;  %v2592_v32 = vld [vmem:[%s3605_s3 + $0xc0] sm:$0xff]   ;;  %v2593_v33 = vld [vmem:[%s3605_s3 + $0x78] sm:$0xff]  }
   0xb   :  { %278 = vmatpush1.bf16.msra.mxu0 %v2570_v6  ;;  %v43_v34 = vld [vmem:[%s3604_s0 + $0x20] sm:$0xff]  ;;  %v45_v35 = vld [vmem:[%s3604_s0 + $0x30] sm:$0xff]  ;;  %v2594_v36 = vld [vmem:[%s3605_s3 + $0xc8] sm:$0xff]  }
   0xc   :  { %279 = vmatprep.subr.bf16.mxu0 %v2571_v7  ;;  %v48_v37 = vld [vmem:[%s3604_s0 + $0x48] sm:$0xff]  ;;  %v50_v38 = vld [vmem:[%s3604_s0 + $0x58] sm:$0xff]  ;;  %v2595_v39 = vld [vmem:[%s3605_s3 + $0x80] sm:$0xff]   ;;  %v89_v41 = vpack.c.bf16 %v45_v35, %v43_v34 }
   0xd   :  { %651 = vmatpush1.bf16.msra.mxu1 %v2590_v25  ;;  %v2596_v40 = vld [vmem:[%s3605_s3 + $0xd0] sm:$0xff]   ;;  %v92_v42 = vpack.c.bf16 %v50_v38, %v48_v37  ;;  %v47_v43 = vld [vmem:[%s3604_s0 + $0x40] sm:$0xff]  ;;  %v52_v45 = vld [vmem:[%s3604_s0 + $0x68] sm:$0xff] }
   0xe   :  { %652 = vmatprep.subr.bf16.mxu1 %v2697_v1  ;;  %v49_v44 = vld [vmem:[%s3604_s0 + $0x50] sm:$0xff]  ;;  %v54_v46 = vld [vmem:[%s3604_s0 + $0x78] sm:$0xff]  ;;  %v51_v49 = vld [vmem:[%s3604_s0 + $0x60] sm:$0xff] }
   0xf   :  { %280 = vmatpush1.bf16.msra.mxu0 %v2573_v8  ;;  %v91_v47 = vpack.c.bf16 %v49_v44, %v47_v43  ;;  %v94_v48 = vpack.c.bf16 %v54_v46, %v52_v45  ;;  %v53_v50 = vld [vmem:[%s3604_s0 + $0x70] sm:$0xff]  ;;  %v56_v51 = vld [vmem:[%s3604_s0 + $0x88] sm:$0xff]  ;;  %v58_v52 = vld [vmem:[%s3604_s0 + $0x98] sm:$0xff] }
  0x10   :  { %281 = vmatprep.subr.bf16.mxu0 %v2574_v10  ;;  %v93_v53 = vpack.c.bf16 %v53_v50, %v51_v49  ;;  %v96_v54 = vpack.c.bf16 %v58_v52, %v56_v51  ;;  %v55_v55 = vld [vmem:[%s3604_s0 + $0x80] sm:$0xff]  ;;  %v57_v56 = vld [vmem:[%s3604_s0 + $0x90] sm:$0xff]  ;;  %v60_v57 = vld [vmem:[%s3604_s0 + $0xa8] sm:$0xff] }
  0x11   :  { %653 = vmatpush1.bf16.msra.mxu1 %v2591_v30  ;;  %v62_v58 = vld [vmem:[%s3604_s0 + $0xb8] sm:$0xff]  ;;  %v95_v59 = vpack.c.bf16 %v57_v56, %v55_v55  ;;  %v59_v61 = vld [vmem:[%s3604_s0 + $0xa0] sm:$0xff]  ;;  %v61_v62 = vld [vmem:[%s3604_s0 + $0xb0] sm:$0xff] }
  0x12   :  { %654 = vmatprep.subr.bf16.mxu1 %v2697_v1  ;;  %v98_v60 = vpack.c.bf16 %v62_v58, %v60_v57  ;;  %v64_v63 = vld [vmem:[%s3604_s0 + $0xc8] sm:$0xff]  ;;  %v66_v0 = vld [vmem:[%s3604_s0 + $0xd8] sm:$0xff]  ;;  %v97_v2 = vpack.c.bf16 %v61_v62, %v59_v61  ;;  %v63_v4 = vld [vmem:[%s3604_s0 + $0xc0] sm:$0xff] }
  0x13   :  { %282 = vmatpush1.bf16.msra.mxu0 %v2576_v13  ;;  %v100_v3 = vpack.c.bf16 %v66_v0, %v64_v63  ;;  %v65_v5 = vld [vmem:[%s3604_s0 + $0xd0] sm:$0xff]  ;;  %v68_v6 = vld [vmem:[%s3604_s0 + $0xe8] sm:$0xff]  ;;  %v70_v7 = vld [vmem:[%s3604_s0 + $0xf8] sm:$0xff] }
  0x14   :  { %283 = vmatprep.subr.bf16.mxu0 %v2577_v14  ;;  %v99_v8 = vpack.c.bf16 %v65_v5, %v63_v4  ;;  %v102_v9 = vpack.c.bf16 %v70_v7, %v68_v6  ;;  %v67_v10 = vld [vmem:[%s3604_s0 + $0xe0] sm:$0xff]  ;;  %v69_v11 = vld [vmem:[%s3604_s0 + $0xf0] sm:$0xff]  ;;  %v72_v12 = vld [vmem:[%s3604_s0 + $0x108] sm:$0xff] }
  0x15   :  { %655 = vmatpush1.bf16.msra.mxu1 %v2593_v33  ;;  %v74_v13 = vld [vmem:[%s3604_s0 + $0x118] sm:$0xff]  ;;  %v101_v14 = vpack.c.bf16 %v69_v11, %v67_v10  ;;  %v75_v22 = vld [vmem:[%s3604_s0 + $0x120] sm:$0xff]  ;;  %v77_v23 = vld [vmem:[%s3604_s0 + $0x130] sm:$0xff] }
  0x16   :  { %656 = vmatprep.subr.bf16.mxu1 %v2697_v1  ;;  %v80_v24 = vld [vmem:[%s3604_s0 + $0x148] sm:$0xff]  ;;  %v82_v25 = vld [vmem:[%s3604_s0 + $0x158] sm:$0xff]  ;;  %v105_v26 = vpack.c.bf16 %v77_v23, %v75_v22  ;;  %v79_v28 = vld [vmem:[%s3604_s0 + $0x140] sm:$0xff] }
  0x17   :  { %284 = vmatpush1.bf16.msra.mxu0 %v2579_v15  ;;  %v104_v15 = vpack.c.bf16 %v74_v13, %v72_v12  ;;  %v84_v30 = vld [vmem:[%s3604_s0 + $0x168] sm:$0xff]  ;;  %v83_v34 = vld [vmem:[%s3604_s0 + $0x160] sm:$0xff]  ;;  %v85_v35 = vld [vmem:[%s3604_s0 + $0x170] sm:$0xff] }
  0x18   :  { %285 = vmatprep.subr.bf16.mxu0 %v2580_v16  ;;  %v71_v16 = vld [vmem:[%s3604_s0 + $0x100] sm:$0xff]  ;;  %v2598_v37 = vld [vmem:[%s3605_s3 + $0xd8] sm:$0xff]   ;;  %v109_v38 = vpack.c.bf16 %v85_v35, %v83_v34  ;;  %v2604_v44 = vld [vmem:[%s3605_s3 + $0xf0] sm:$0xff]  }
  0x19   :  { %657 = vmatpush1.bf16.msra.mxu1 %v2595_v39  ;;  %v2599_v39 = vld [vmem:[%s3605_s3 + $0x90] sm:$0xff]   ;;  %v2603_v43 = vld [vmem:[%s3605_s3 + $0xa0] sm:$0xff]   ;;  %v2605_v45 = vld [vmem:[%s3605_s3 + $0xa8] sm:$0xff]  }
  0x1a   :  { %658 = vmatprep.subr.bf16.mxu1 %v2697_v1  ;;  %v2606_v46 = vld [vmem:[%s3605_s3 + $0xf8] sm:$0xff]   ;;  %v2610_v50 = vld [vmem:[%s3605_s3 + $0x108] sm:$0xff]   ;;  %v2611_v51 = vld [vmem:[%s3605_s3 + $0x110] sm:$0xff]  }
  0x1b   :  { %286 = vmatpush1.bf16.msra.mxu0 %v2582_v17  ;;  %v73_v17 = vld [vmem:[%s3604_s0 + $0x110] sm:$0xff]  ;;  %v2609_v49 = vld [vmem:[%s3605_s3 + $0xb8] sm:$0xff]   ;;  %v129_v56 = vld [vmem:[%s3606_s2] sm:$0x3] }
  0x1c   :  { %287 = vmatprep.subr.bf16.mxu0 %v2583_v18  ;;  %v76_v18 = vld [vmem:[%s3604_s0 + $0x128] sm:$0xff]  ;;  %v2612_v52 = vld [vmem:[%s3605_s3 + $0x118] sm:$0xff]  }
  0x1f   :  { %288 = vmatpush1.bf16.msra.mxu0 %v2585_v19  ;;  %v78_v19 = vld [vmem:[%s3604_s0 + $0x138] sm:$0xff] }
  0x20   :  { %2096 = vmatprep.subr.msk.bf16.mxu0 %vm266_vm1, %v2586_v20  ;;  %v103_v20 = vpack.c.bf16 %v73_v17, %v71_v16  ;;  %v106_v21 = vpack.c.bf16 %v78_v19, %v76_v18 }
  0x23   :  { %290 = vmatpush1.bf16.msra.mxu0 %v268_v27  ;;  %v108_v27 = vpack.c.bf16 %v82_v25, %v80_v24 }
  0x24   :  { %964 = vmatprep.subr.bf16.mxu0 %v2697_v1 }
  0x26   :  { %306 = vmatmul.mubr.bf16.vlgmr.msra.gmra.mrb[0].mxu0 %v87_v29  ;;  %v81_v29 = vld [vmem:[%s3604_s0 + $0x150] sm:$0xff] }
  0x27   :  { %2098 = vmatprep.mubr.msk.bf16.mxu0 %vm229_vm0, %v90_v31  ;;  %965 = vmatpush1.bf16.msra.mxu0 %v2592_v32  ;;  %v86_v31 = vld [vmem:[%s3604_s0 + $0x178] sm:$0xff]  ;;  %v107_v32 = vpack.c.bf16 %v81_v29, %v79_v28 }
  0x28   :  { %966 = vmatprep.subr.bf16.mxu0 %v2697_v1  ;;  %v110_v33 = vpack.c.bf16 %v86_v31, %v84_v30 }
  0x2b   :  { %967 = vmatpush1.bf16.msra.mxu0 %v2594_v36  ;;  %v2597_v36 = vld [vmem:[%s3605_s3 + $0x88] sm:$0xff]  }
  0x2c   :  { %968 = vmatprep.subr.bf16.mxu0 %v2697_v1  ;;  %659 = vmatpush1.bf16.msra.mxu1 %v2597_v36 }
  0x2d   :  { %660 = vmatprep.subr.bf16.mxu1 %v2697_v1 }
  0x2e   :  { %316 = vmatmul.mubr.bf16.gmra.mrb[4].mxu0 %v89_v41  ;;  %v2601_v41 = vld [vmem:[%s3605_s3 + $0x98] sm:$0xff]  }
  0x2f   :  { %2099 = vmatprep.mubr.msk.bf16.mxu0 %vm229_vm0, %v92_v42  ;;  %969 = vmatpush1.bf16.msra.mxu0 %v2596_v40  ;;  %v2600_v40 = vld [vmem:[%s3605_s3 + $0xe0] sm:$0xff]   ;;  %v2602_v42 = vld [vmem:[%s3605_s3 + $0xe8] sm:$0xff]  }
  0x30   :  { %970 = vmatprep.subr.bf16.mxu0 %v2697_v1  ;;  %661 = vmatpush1.bf16.msra.mxu1 %v2599_v39 }
  0x31   :  { %662 = vmatprep.subr.bf16.mxu1 %v2697_v1 }
  0x33   :  { %971 = vmatpush1.bf16.msra.mxu0 %v2598_v37 }
  0x34   :  { %972 = vmatprep.subr.bf16.mxu0 %v2697_v1  ;;  %663 = vmatpush1.bf16.msra.mxu1 %v2601_v41 }
  0x35   :  { %664 = vmatprep.subr.bf16.mxu1 %v2697_v1 }
  0x36   :  { %326 = vmatmul.mubr.bf16.gmra.mrb[8].mxu0 %v91_v47  ;;  %v2607_v47 = vld [vmem:[%s3605_s3 + $0xb0] sm:$0xff]  }
  0x37   :  { %2100 = vmatprep.mubr.msk.bf16.mxu0 %vm229_vm0, %v94_v48  ;;  %973 = vmatpush1.bf16.msra.mxu0 %v2600_v40  ;;  %v2608_v48 = vld [vmem:[%s3605_s3 + $0x100] sm:$0xff]  }
  0x38   :  { %974 = vmatprep.subr.bf16.mxu0 %v2697_v1  ;;  %665 = vmatpush1.bf16.msra.mxu1 %v2603_v43 }
  0x39   :  { %666 = vmatprep.subr.bf16.mxu1 %v2697_v1 }
  0x3b   :  { %975 = vmatpush1.bf16.msra.mxu0 %v2602_v42 }
  0x3c   :  { %976 = vmatprep.subr.bf16.mxu0 %v2697_v1  ;;  %667 = vmatpush1.bf16.msra.mxu1 %v2605_v45 }
  0x3d   :  { %668 = vmatprep.subr.bf16.mxu1 %v2697_v1 }
  0x3e   :  { %336 = vmatmul.mubr.bf16.gmra.mrb[12].mxu0 %v93_v53  ;;  %v131_v53 = vlaneseq }
  0x3f   :  { %2101 = vmatprep.mubr.msk.bf16.mxu0 %vm229_vm0, %v96_v54  ;;  %977 = vmatpush1.bf16.msra.mxu0 %v2604_v44 }
  0x40   :  { %978 = vmatprep.subr.bf16.mxu0 %v2697_v1  ;;  %669 = vmatpush1.bf16.msra.mxu1 %v2607_v47  ;;  %v132_v54 = vshrl.u32 %v131_v53, 7 }
  0x41   :  { %670 = vmatprep.subr.bf16.mxu1 %v2697_v1 }
  0x42   :  { %v133_v55 = vsub.s32 0, %v132_v54  ;;  %v137_v57 = vsub.s32 1, %v132_v54 }
  0x43   :  { %979 = vmatpush1.bf16.msra.mxu0 %v2606_v46 }
  0x44   :  { %980 = vmatprep.subr.bf16.mxu0 %v2697_v1  ;;  %671 = vmatpush1.bf16.msra.mxu1 %v2609_v49  ;;  %v3071_v58 = vrot.slane %v129_v56, %v133_v55 }
  0x45   :  { %797 = vmatprep.subr.bf16.mxu1 %v2697_v1 }
  0x46   :  { %346 = vmatmul.mubr.bf16.gmra.mrb[16].mxu0 %v95_v59  ;;  %v3073_v59 = vrot.slane %v129_v56, %v137_v57  ;;  %v2614_v56 = vld [vmem:[%s3605_s3 + $0x8] sm:$0xff]  }
  0x47   :  { %2102 = vmatprep.mubr.msk.bf16.mxu0 %vm229_vm0, %v98_v60  ;;  %981 = vmatpush1.bf16.msra.mxu0 %v2608_v48  ;;  %v2613_v48 = vld [vmem:[%s3605_s3] sm:$0xff]  }
  0x48   :  { %982 = vmatprep.subr.bf16.mxu0 %v2697_v1 }
  0x4b   :  { %983 = vmatpush1.bf16.msra.mxu0 %v2610_v50 }
  0x4c   :  { %984 = vmatprep.subr.bf16.mxu0 %v2697_v1 }
  0x4e   :  { %356 = vmatmul.mubr.bf16.gmra.mrb[20].mxu0 %v97_v2 }
  0x4f   :  { %2103 = vmatprep.mubr.msk.bf16.mxu0 %vm229_vm0, %v100_v3  ;;  %985 = vmatpush1.bf16.msra.mxu0 %v2611_v51 }
  0x50   :  { %986 = vmatprep.subr.bf16.mxu0 %v2697_v1 }
  0x53   :  { %987 = vmatpush1.bf16.msra.mxu0 %v2612_v52 }
  0x54   :  { %1314 = vmatprep.subr.bf16.mxu0 %v2697_v1 }
  0x56   :  { %366 = vmatmul.mubr.bf16.gmra.mrb[24].mxu0 %v99_v8 }
  0x57   :  { %2104 = vmatprep.mubr.msk.bf16.mxu0 %vm229_vm0, %v102_v9 }
  0x5e   :  { %376 = vmatmul.mubr.bf16.gmra.mrb[28].mxu0 %v101_v14 }
  0x5f   :  { %2105 = vmatprep.mubr.msk.bf16.mxu0 %vm229_vm0, %v104_v15 }
  0x66   :  { %386 = vmatmul.mubr.bf16.gmra.mrb[32].mxu0 %v103_v20 }
  0x67   :  { %2106 = vmatprep.mubr.msk.bf16.mxu0 %vm229_vm0, %v106_v21 }
  0x6e   :  { %396 = vmatmul.mubr.bf16.gmra.mrb[36].mxu0 %v105_v26 }
  0x6f   :  { %2107 = vmatprep.mubr.msk.bf16.mxu0 %vm229_vm0, %v108_v27 }
  0x76   :  { %406 = vmatmul.mubr.bf16.gmra.mrb[40].mxu0 %v107_v32 }
  0x77   :  { %2108 = vmatprep.mubr.msk.bf16.mxu0 %vm229_vm0, %v110_v33 }
  0x7e   :  { %416 = vmatmul.mubr.bf16.gmra.mrb[44].mxu0 %v109_v38 }
  0xf9   :  { %v307_v60 = vpop.f32.mrb[0].mxu0 }
  0xfa   :  { %v308_v61 = vadd.f32 %v307_v60, %v3071_v58  ;;  %v309_v62 = vpop.f32.mrb[1].mxu0 }
  0xfb   :  { %v310_v63 = vadd.f32 %v309_v62, %v3073_v59  ;;  %v311_v0 = vpop.f32.mrb[2].mxu0 }
  0xfc   :  { %v312_v2 = vadd.f32 %v311_v0, %v3071_v58  ;;  %v313_v3 = vpop.f32.mrb[3].mxu0  ;;  %v426_v5 = vmax.f32 %v308_v61, 0.0 }
  0xfd   :  { %v314_v4 = vadd.f32 %v313_v3, %v3073_v59  ;;  %v427_v7 = vmax.f32 %v310_v63, 0.0 }
  0xfe   :  { %v428_v6 = vmax.f32 %v312_v2, 0.0 }
  0xff   :  { %v429_v8 = vmax.f32 %v314_v4, 0.0 }
 0x100   :  { %v3079_v9 = vadd.f32 %v428_v6, %v426_v5  ;;  %v2615_v5 = vld [vmem:[%s3605_s3 + $0x10] sm:$0xff]   ;;  %v2616_v6 = vld [vmem:[%s3605_s3 + $0x180] sm:$0xff]  }
 0x101   :  { %v3081_v10 = vadd.f32 %v429_v8, %v427_v7  ;;  %v317_v11 = vpop.f32.mrb[4].mxu0 }
 0x102   :  { %v318_v12 = vadd.f32 %v317_v11, %v3071_v58  ;;  %v319_v13 = vpop.f32.mrb[5].mxu0 }
 0x103   :  { %v320_v14 = vadd.f32 %v319_v13, %v3073_v59  ;;  %v321_v15 = vpop.f32.mrb[6].mxu0 }
 0x104   :  { %v322_v16 = vadd.f32 %v321_v15, %v3071_v58  ;;  %v323_v17 = vpop.f32.mrb[7].mxu0  ;;  %v430_v19 = vmax.f32 %v318_v12, 0.0 }
 0x105   :  { %v324_v18 = vadd.f32 %v323_v17, %v3073_v59  ;;  %v431_v21 = vmax.f32 %v320_v14, 0.0  ;;  %v2618_v17 = vld [vmem:[%s3605_s3 + $0x188] sm:$0xff]  }
 0x106   :  { %v432_v20 = vmax.f32 %v322_v16, 0.0  ;;  %v2617_v16 = vld [vmem:[%s3605_s3 + $0x18] sm:$0xff]  }
 0x107   :  { %v433_v22 = vmax.f32 %v324_v18, 0.0 }
 0x108   :  { %v3087_v23 = vadd.f32 %v432_v20, %v430_v19 }
 0x109   :  { %v3089_v24 = vadd.f32 %v433_v22, %v431_v21  ;;  %v327_v25 = vpop.f32.mrb[8].mxu0 }
 0x10a   :  { %v498_v26 = vpack.c.bf16 %v3087_v23, %v3079_v9  ;;  %v328_v27 = vadd.f32 %v327_v25, %v3071_v58  ;;  %v329_v28 = vpop.f32.mrb[9].mxu0 }
 0x10b   :  { %v499_v29 = vpack.c.bf16 %v3089_v24, %v3081_v10  ;;  %v330_v30 = vadd.f32 %v329_v28, %v3073_v59  ;;  %v331_v31 = vpop.f32.mrb[10].mxu0 }
 0x10c   :  { %v332_v32 = vadd.f32 %v331_v31, %v3071_v58  ;;  %v333_v33 = vpop.f32.mrb[11].mxu0  ;;  %v434_v35 = vmax.f32 %v328_v27, 0.0  ;;  %v2619_v31 = vld [vmem:[%s3605_s3 + $0x20] sm:$0xff]  }
 0x10d   :  { %v334_v34 = vadd.f32 %v333_v33, %v3073_v59  ;;  %v435_v37 = vmax.f32 %v330_v30, 0.0 }
 0x10e   :  { %v436_v36 = vmax.f32 %v332_v32, 0.0  ;;  %v2620_v32 = vld [vmem:[%s3605_s3 + $0x190] sm:$0xff]  }
 0x10f   :  { %v437_v38 = vmax.f32 %v334_v34, 0.0 }
 0x110   :  { %v478_v39 = vadd.f32 %v436_v36, %v434_v35 }
 0x111   :  { %v479_v40 = vadd.f32 %v437_v38, %v435_v37  ;;  %v337_v41 = vpop.f32.mrb[12].mxu0 }
 0x112   :  { %v338_v42 = vadd.f32 %v337_v41, %v3071_v58  ;;  %v339_v43 = vpop.f32.mrb[13].mxu0  ;;  %v530_v44 = vpack.c.bf16 %v478_v39, %v3087_v23  ;;  %v2622_v41 = vld [vmem:[%s3605_s3 + $0x198] sm:$0xff]  }
 0x113   :  { %v340_v45 = vadd.f32 %v339_v43, %v3073_v59  ;;  %v341_v46 = vpop.f32.mrb[14].mxu0  ;;  %v531_v47 = vpack.c.bf16 %v479_v40, %v3089_v24 }
 0x114   :  { %v342_v49 = vadd.f32 %v341_v46, %v3071_v58  ;;  %v343_v50 = vpop.f32.mrb[15].mxu0  ;;  %v438_v52 = vmax.f32 %v338_v42, 0.0 }
 0x115   :  { %v344_v51 = vadd.f32 %v343_v50, %v3073_v59  ;;  %2145 = vmatprep.mubr.msk.bf16.mxu1 %vm635_vm2, %v531_v47  ;;  %v439_v54 = vmax.f32 %v340_v45, 0.0 }
 0x116   :  { %v440_v53 = vmax.f32 %v342_v49, 0.0  ;;  %681 = vmatmul.mubr.bf16.vlgmr.msra.gmra.mrb[0].mxu1 %v530_v44 }
 0x117   :  { %v441_v55 = vmax.f32 %v344_v51, 0.0  ;;  %798 = vmatpush1.bf16.msra.mxu1 %v2613_v48  ;;  %v2623_v51 = vld [vmem:[%s3605_s3 + $0x30] sm:$0xff]  }
 0x118   :  { %v480_v57 = vadd.f32 %v440_v53, %v438_v52  ;;  %799 = vmatprep.subr.bf16.mxu1 %v2697_v1  ;;  %v2624_v52 = vld [vmem:[%s3605_s3 + $0x1a0] sm:$0xff]  }
 0x119   :  { %v481_v60 = vadd.f32 %v441_v55, %v439_v54  ;;  %v347_v61 = vpop.f32.mrb[16].mxu0 }
 0x11a   :  { %v3113_v62 = vpack.c.bf16 %v480_v57, %v478_v39  ;;  %v348_v63 = vadd.f32 %v347_v61, %v3071_v58  ;;  %v349_v0 = vpop.f32.mrb[17].mxu0 }
 0x11b   :  { %v3116_v2 = vpack.c.bf16 %v481_v60, %v479_v40  ;;  %v350_v3 = vadd.f32 %v349_v0, %v3073_v59  ;;  %v351_v4 = vpop.f32.mrb[18].mxu0  ;;  %800 = vmatpush1.bf16.msra.mxu1 %v2614_v56  ;;  %v2621_v40 = vld [vmem:[%s3605_s3 + $0x28] sm:$0xff]  }
 0x11c   :  { %v352_v7 = vadd.f32 %v351_v4, %v3071_v58  ;;  %v353_v8 = vpop.f32.mrb[19].mxu0  ;;  %801 = vmatprep.subr.bf16.mxu1 %v2697_v1  ;;  %v442_v12 = vmax.f32 %v348_v63, 0.0  ;;  %v2625_v63 = vld [vmem:[%s3605_s3 + $0x38] sm:$0xff]   ;;  %v2626_v0 = vld [vmem:[%s3605_s3 + $0x1a8] sm:$0xff]  }
 0x11d   :  { %v354_v11 = vadd.f32 %v353_v8, %v3073_v59  ;;  %2201 = vmatprep.mubr.msk.bf16.mxu0 %vm635_vm2, %v3116_v2  ;;  %v443_v14 = vmax.f32 %v350_v3, 0.0 }
 0x11e   :  { %v444_v13 = vmax.f32 %v352_v7, 0.0  ;;  %997 = vmatmul.mubr.bf16.vlgmr.msra.gmra.mrb[48].mxu0 %v3113_v62 }
 0x11f   :  { %v445_v15 = vmax.f32 %v354_v11, 0.0  ;;  %802 = vmatpush1.bf16.msra.mxu1 %v2615_v5  ;;  %1315 = vmatpush1.bf16.msra.mxu0 %v2616_v6 }
 0x120   :  { %v482_v18 = vadd.f32 %v444_v13, %v442_v12  ;;  %803 = vmatprep.subr.bf16.mxu1 %v2697_v1  ;;  %1316 = vmatprep.subr.bf16.mxu0 %v2697_v1 }
 0x121   :  { %v483_v19 = vadd.f32 %v445_v15, %v443_v14  ;;  %v357_v20 = vpop.f32.mrb[20].mxu0  ;;  %v2627_v14 = vld [vmem:[%s3605_s3 + $0x40] sm:$0xff]   ;;  %v2628_v15 = vld [vmem:[%s3605_s3 + $0x1b0] sm:$0xff]  }
 0x122   :  { %v358_v21 = vadd.f32 %v357_v20, %v3071_v58  ;;  %v359_v22 = vpop.f32.mrb[21].mxu0  ;;  %v3140_v25 = vpack.c.bf16 %v482_v18, %v480_v57 }
 0x123   :  { %v3142_v27 = vpack.c.bf16 %v483_v19, %v481_v60  ;;  %v360_v28 = vadd.f32 %v359_v22, %v3073_v59  ;;  %v361_v30 = vpop.f32.mrb[22].mxu0  ;;  %804 = vmatpush1.bf16.msra.mxu1 %v2617_v16  ;;  %1317 = vmatpush1.bf16.msra.mxu0 %v2618_v17 }
 0x124   :  { %v362_v33 = vadd.f32 %v361_v30, %v3071_v58  ;;  %v363_v34 = vpop.f32.mrb[23].mxu0  ;;  %805 = vmatprep.subr.bf16.mxu1 %v2697_v1  ;;  %1318 = vmatprep.subr.bf16.mxu0 %v2697_v1  ;;  %v446_v36 = vmax.f32 %v358_v21, 0.0  ;;  %v2630_v30 = vld [vmem:[%s3605_s3 + $0x1b8] sm:$0xff]  }
 0x125   :  { %v364_v35 = vadd.f32 %v363_v34, %v3073_v59  ;;  %2146 = vmatprep.mubr.msk.bf16.mxu1 %vm635_vm2, %v3142_v27  ;;  %v447_v38 = vmax.f32 %v360_v28, 0.0  ;;  %v2629_v28 = vld [vmem:[%s3605_s3 + $0x48] sm:$0xff]  }
 0x126   :  { %v448_v37 = vmax.f32 %v362_v33, 0.0  ;;  %689 = vmatmul.mubr.bf16.gmra.mrb[4].mxu1 %v3140_v25 }
 0x127   :  { %v449_v39 = vmax.f32 %v364_v35, 0.0  ;;  %806 = vmatpush1.bf16.msra.mxu1 %v2619_v31  ;;  %1319 = vmatpush1.bf16.msra.mxu0 %v2620_v32 }
 0x128   :  { %v484_v42 = vadd.f32 %v448_v37, %v446_v36  ;;  %807 = vmatprep.subr.bf16.mxu1 %v2697_v1  ;;  %1320 = vmatprep.subr.bf16.mxu0 %v2697_v1 }
 0x129   :  { %v485_v43 = vadd.f32 %v449_v39, %v447_v38  ;;  %v367_v44 = vpop.f32.mrb[24].mxu0 }
 0x12a   :  { %v368_v45 = vadd.f32 %v367_v44, %v3071_v58  ;;  %v369_v46 = vpop.f32.mrb[25].mxu0  ;;  %v3167_v47 = vpack.c.bf16 %v484_v42, %v482_v18 }
 0x12b   :  { %v3169_v48 = vpack.c.bf16 %v485_v43, %v483_v19  ;;  %v370_v49 = vadd.f32 %v369_v46, %v3073_v59  ;;  %v371_v50 = vpop.f32.mrb[26].mxu0  ;;  %808 = vmatpush1.bf16.msra.mxu1 %v2621_v40  ;;  %1321 = vmatpush1.bf16.msra.mxu0 %v2622_v41  ;;  %v2631_v40 = vld [vmem:[%s3605_s3 + $0x50] sm:$0xff]   ;;  %v2632_v41 = vld [vmem:[%s3605_s3 + $0x1c0] sm:$0xff]  }
 0x12c   :  { %v372_v53 = vadd.f32 %v371_v50, %v3071_v58  ;;  %v373_v54 = vpop.f32.mrb[27].mxu0  ;;  %809 = vmatprep.subr.bf16.mxu1 %v2697_v1  ;;  %1322 = vmatprep.subr.bf16.mxu0 %v2697_v1  ;;  %v450_v56 = vmax.f32 %v368_v45, 0.0 }
 0x12d   :  { %v374_v55 = vadd.f32 %v373_v54, %v3073_v59  ;;  %2202 = vmatprep.mubr.msk.bf16.mxu0 %vm635_vm2, %v3169_v48  ;;  %v451_v60 = vmax.f32 %v370_v49, 0.0 }
 0x12e   :  { %v452_v57 = vmax.f32 %v372_v53, 0.0  ;;  %1005 = vmatmul.mubr.bf16.gmra.mrb[52].mxu0 %v3167_v47 }
 0x12f   :  { %v453_v61 = vmax.f32 %v374_v55, 0.0  ;;  %810 = vmatpush1.bf16.msra.mxu1 %v2623_v51  ;;  %1323 = vmatpush1.bf16.msra.mxu0 %v2624_v52  ;;  %v2633_v51 = vld [vmem:[%s3605_s3 + $0x58] sm:$0xff]   ;;  %v2634_v52 = vld [vmem:[%s3605_s3 + $0x1c8] sm:$0xff]  }
 0x130   :  { %v486_v3 = vadd.f32 %v452_v57, %v450_v56  ;;  %811 = vmatprep.subr.bf16.mxu1 %v2697_v1  ;;  %1324 = vmatprep.subr.bf16.mxu0 %v2697_v1 }
 0x131   :  { %v487_v4 = vadd.f32 %v453_v61, %v451_v60  ;;  %v377_v5 = vpop.f32.mrb[28].mxu0 }
 0x132   :  { %v378_v6 = vadd.f32 %v377_v5, %v3071_v58  ;;  %v379_v7 = vpop.f32.mrb[29].mxu0  ;;  %v3194_v8 = vpack.c.bf16 %v486_v3, %v484_v42 }
 0x133   :  { %v3196_v11 = vpack.c.bf16 %v487_v4, %v485_v43  ;;  %v380_v12 = vadd.f32 %v379_v7, %v3073_v59  ;;  %v381_v13 = vpop.f32.mrb[30].mxu0  ;;  %812 = vmatpush1.bf16.msra.mxu1 %v2625_v63  ;;  %1325 = vmatpush1.bf16.msra.mxu0 %v2626_v0 }
 0x134   :  { %v382_v16 = vadd.f32 %v381_v13, %v3071_v58  ;;  %v383_v17 = vpop.f32.mrb[31].mxu0  ;;  %813 = vmatprep.subr.bf16.mxu1 %v2697_v1  ;;  %1326 = vmatprep.subr.bf16.mxu0 %v2697_v1  ;;  %v454_v19 = vmax.f32 %v378_v6, 0.0 }
 0x135   :  { %v384_v18 = vadd.f32 %v383_v17, %v3073_v59  ;;  %2147 = vmatprep.mubr.msk.bf16.mxu1 %vm635_vm2, %v3196_v11  ;;  %v455_v21 = vmax.f32 %v380_v12, 0.0 }
 0x136   :  { %v456_v20 = vmax.f32 %v382_v16, 0.0  ;;  %697 = vmatmul.mubr.bf16.gmra.mrb[8].mxu1 %v3194_v8 }
 0x137   :  { %v457_v22 = vmax.f32 %v384_v18, 0.0  ;;  %814 = vmatpush1.bf16.msra.mxu1 %v2627_v14  ;;  %1327 = vmatpush1.bf16.msra.mxu0 %v2628_v15  ;;  %v2638_v15 = vld [vmem:[%s3605_s3 + $0x1d8] sm:$0xff]  }
 0x138   :  { %v488_v31 = vadd.f32 %v456_v20, %v454_v19  ;;  %815 = vmatprep.subr.bf16.mxu1 %v2697_v1  ;;  %1328 = vmatprep.subr.bf16.mxu0 %v2697_v1 }
 0x139   :  { %v489_v32 = vadd.f32 %v457_v22, %v455_v21  ;;  %v387_v33 = vpop.f32.mrb[32].mxu0 }
 0x13a   :  { %v388_v34 = vadd.f32 %v387_v33, %v3071_v58  ;;  %v389_v35 = vpop.f32.mrb[33].mxu0  ;;  %v3221_v36 = vpack.c.bf16 %v488_v31, %v486_v3  ;;  %v2636_v3 = vld [vmem:[%s3605_s3 + $0x1d0] sm:$0xff]  }
 0x13b   :  { %v3223_v37 = vpack.c.bf16 %v489_v32, %v487_v4  ;;  %v390_v38 = vadd.f32 %v389_v35, %v3073_v59  ;;  %v391_v39 = vpop.f32.mrb[34].mxu0  ;;  %816 = vmatpush1.bf16.msra.mxu1 %v2629_v28  ;;  %1329 = vmatpush1.bf16.msra.mxu0 %v2630_v30  ;;  %v2637_v35 = vld [vmem:[%s3605_s3 + $0x128] sm:$0xff]  }
 0x13c   :  { %v392_v42 = vadd.f32 %v391_v39, %v3071_v58  ;;  %v393_v43 = vpop.f32.mrb[35].mxu0  ;;  %817 = vmatprep.subr.bf16.mxu1 %v2697_v1  ;;  %1330 = vmatprep.subr.bf16.mxu0 %v2697_v1  ;;  %v458_v45 = vmax.f32 %v388_v34, 0.0 }
 0x13d   :  { %v394_v44 = vadd.f32 %v393_v43, %v3073_v59  ;;  %2203 = vmatprep.mubr.msk.bf16.mxu0 %vm635_vm2, %v3223_v37  ;;  %v459_v49 = vmax.f32 %v390_v38, 0.0 }
 0x13e   :  { %v460_v46 = vmax.f32 %v392_v42, 0.0  ;;  %1013 = vmatmul.mubr.bf16.gmra.mrb[56].mxu0 %v3221_v36 }
 0x13f   :  { %v461_v50 = vmax.f32 %v394_v44, 0.0  ;;  %818 = vmatpush1.bf16.msra.mxu1 %v2631_v40  ;;  %1331 = vmatpush1.bf16.msra.mxu0 %v2632_v41  ;;  %v2639_v41 = vld [vmem:[%s3605_s3 + $0x130] sm:$0xff]  }
 0x140   :  { %v490_v53 = vadd.f32 %v460_v46, %v458_v45  ;;  %819 = vmatprep.subr.bf16.mxu1 %v2697_v1  ;;  %1332 = vmatprep.subr.bf16.mxu0 %v2697_v1 }
 0x141   :  { %v491_v54 = vadd.f32 %v461_v50, %v459_v49  ;;  %v397_v55 = vpop.f32.mrb[36].mxu0 }
 0x142   :  { %v398_v56 = vadd.f32 %v397_v55, %v3071_v58  ;;  %v399_v57 = vpop.f32.mrb[37].mxu0  ;;  %v3248_v60 = vpack.c.bf16 %v490_v53, %v488_v31  ;;  %v2641_v55 = vld [vmem:[%s3605_s3 + $0x140] sm:$0xff]  }
 0x143   :  { %v3250_v61 = vpack.c.bf16 %v491_v54, %v489_v32  ;;  %v400_v63 = vadd.f32 %v399_v57, %v3073_v59  ;;  %v401_v0 = vpop.f32.mrb[38].mxu0  ;;  %820 = vmatpush1.bf16.msra.mxu1 %v2633_v51  ;;  %1333 = vmatpush1.bf16.msra.mxu0 %v2634_v52  ;;  %v2643_v57 = vld [vmem:[%s3605_s3 + $0x150] sm:$0xff]  }
 0x144   :  { %v462_v4 = vmax.f32 %v398_v56, 0.0  ;;  %v402_v5 = vadd.f32 %v401_v0, %v3071_v58  ;;  %v403_v6 = vpop.f32.mrb[39].mxu0  ;;  %1139 = vmatprep.subr.bf16.mxu1 %v2697_v1  ;;  %1334 = vmatprep.subr.bf16.mxu0 %v2697_v1  ;;  %v2642_v56 = vld [vmem:[%s3605_s3 + $0x148] sm:$0xff]  }
 0x145   :  { %v463_v7 = vmax.f32 %v400_v63, 0.0  ;;  %v404_v12 = vadd.f32 %v403_v6, %v3073_v59  ;;  %2148 = vmatprep.mubr.msk.bf16.mxu1 %vm635_vm2, %v3250_v61  ;;  %v2648_v63 = vld [vmem:[%s3605_s3 + $0x178] sm:$0xff]   ;;  %v2654_v0 = vld [vmem:[%s3607_s5 + $0x88] sm:$0xff]  }
 0x146   :  { %v464_v13 = vmax.f32 %v402_v5, 0.0  ;;  %705 = vmatmul.mubr.bf16.gmra.mrb[12].mxu1 %v3248_v60  ;;  %v2657_v5 = vld [vmem:[%s3607_s5 + $0x68] sm:$0xff]   ;;  %v2658_v6 = vld [vmem:[%s3607_s5 + $0x98] sm:$0xff]  }
 0x147   :  { %v465_v14 = vmax.f32 %v404_v12, 0.0  ;;  %2161 = vmatprep.mubr.msk.bf16.mxu1 %vm635_vm2, %v499_v29  ;;  %1335 = vmatpush1.bf16.msra.mxu0 %v2636_v3  ;;  %v2635_v29 = vld [vmem:[%s3605_s3 + $0x120] sm:$0xff]  }
 0x148   :  { %v3270_v16 = vadd.f32 %v464_v13, %v462_v4  ;;  %1336 = vmatprep.subr.bf16.mxu0 %v2697_v1  ;;  %v2655_v3 = vld [vmem:[%s3607_s5 + $0x60] sm:$0xff]   ;;  %v2656_v4 = vld [vmem:[%s3607_s5 + $0x90] sm:$0xff]   ;;  %v2661_v13 = vld [vmem:[%s3607_s5 + $0x78] sm:$0xff]  }
 0x149   :  { %v3273_v17 = vadd.f32 %v465_v14, %v463_v7  ;;  %v407_v18 = vpop.f32.mrb[40].mxu0  ;;  %v2659_v7 = vld [vmem:[%s3607_s5 + $0x70] sm:$0xff]   ;;  %v2660_v12 = vld [vmem:[%s3607_s5 + $0xa0] sm:$0xff]   ;;  %v2662_v14 = vld [vmem:[%s3607_s5 + $0xa8] sm:$0xff]  }
 0x14a   :  { %v3276_v19 = vpack.c.bf16 %v3270_v16, %v490_v53  ;;  %v408_v20 = vadd.f32 %v407_v18, %v3071_v58  ;;  %v409_v10 = vpop.f32.mrb[41].mxu0  ;;  %v2640_v53 = vld [vmem:[%s3605_s3 + $0x138] sm:$0xff]  }
 0x14b   :  { %v863_v24 = vpack.c.bf16 %v3273_v17, %v491_v54  ;;  %1337 = vmatpush1.bf16.msra.mxu0 %v2638_v15  ;;  %v410_v21 = vadd.f32 %v409_v10, %v3073_v59  ;;  %v411_v22 = vpop.f32.mrb[42].mxu0  ;;  %v2664_v15 = vld [vmem:[%s3607_s5 + $0xb0] sm:$0xff]  }
 0x14c   :  { %v466_v28 = vmax.f32 %v408_v20, 0.0  ;;  %v412_v30 = vadd.f32 %v411_v22, %v3071_v58  ;;  %v413_v31 = vpop.f32.mrb[43].mxu0  ;;  %v2666_v20 = vld [vmem:[%s3607_s5 + $0xb8] sm:$0xff]  }
 0x14d   :  { %2204 = vmatprep.mubr.msk.bf16.mxu0 %vm635_vm2, %v863_v24  ;;  %v467_v32 = vmax.f32 %v410_v21, 0.0  ;;  %v414_v33 = vadd.f32 %v413_v31, %v3073_v59 }
 0x14e   :  { %830 = vmatmul.mubr.bf16.vlgmr.msra.gmra.mrb[16].mxu1 %v498_v26  ;;  %1021 = vmatmul.mubr.bf16.gmra.mrb[60].mxu0 %v3276_v19  ;;  %v468_v34 = vmax.f32 %v412_v30, 0.0 }
 0x14f   :  { %1140 = vmatpush1.bf16.msra.mxu1 %v2635_v29  ;;  %2162 = vmatprep.mubr.msk.bf16.mxu1 %vm635_vm2, %v3116_v2  ;;  %v469_v38 = vmax.f32 %v414_v33, 0.0 }
 0x150   :  { %2281 = vmatprep.mubr.msk.bf16.mxu0 %vm635_vm2, %v3169_v48  ;;  %1141 = vmatprep.subr.bf16.mxu1 %v2697_v1  ;;  %v3299_v39 = vadd.f32 %v468_v34, %v466_v28 }
 0x151   :  { %v3301_v9 = vadd.f32 %v469_v38, %v467_v32  ;;  %v417_v23 = vpop.f32.mrb[44].mxu0 }
 0x152   :  { %v418_v26 = vadd.f32 %v417_v23, %v3071_v58  ;;  %v419_v40 = vpop.f32.mrb[45].mxu0  ;;  %v1037_v2 = vpack.c.bf16 %v3299_v39, %v3270_v16 }
 0x153   :  { %1142 = vmatpush1.bf16.msra.mxu1 %v2637_v35  ;;  %v1038_v42 = vpack.c.bf16 %v3301_v9, %v3273_v17  ;;  %v420_v43 = vadd.f32 %v419_v40, %v3073_v59  ;;  %v421_v44 = vpop.f32.mrb[46].mxu0 }
 0x154   :  { %1143 = vmatprep.subr.bf16.mxu1 %v2697_v1  ;;  %v470_v45 = vmax.f32 %v418_v26, 0.0  ;;  %v422_v46 = vadd.f32 %v421_v44, %v3071_v58  ;;  %v423_v49 = vpop.f32.mrb[47].mxu0 }
 0x155   :  { %v471_v50 = vmax.f32 %v420_v43, 0.0  ;;  %v424_v51 = vadd.f32 %v423_v49, %v3073_v59 }
 0x156   :  { %838 = vmatmul.mubr.bf16.gmra.mrb[20].mxu1 %v3113_v62  ;;  %1347 = vmatmul.mubr.bf16.vlgmr.msra.gmra.mrb[64].mxu0 %v3167_v47  ;;  %v472_v52 = vmax.f32 %v422_v46, 0.0 }
 0x157   :  { %1144 = vmatpush1.bf16.msra.mxu1 %v2639_v41  ;;  %2163 = vmatprep.mubr.msk.bf16.mxu1 %vm635_vm2, %v3169_v48  ;;  %v473_v54 = vmax.f32 %v424_v51, 0.0 }
 0x158   :  { %2282 = vmatprep.mubr.msk.bf16.mxu0 %vm635_vm2, %v3223_v37  ;;  %1145 = vmatprep.subr.bf16.mxu1 %v2697_v1  ;;  %v496_v58 = vadd.f32 %v472_v52, %v470_v45 }
 0x159   :  { %v497_v59 = vadd.f32 %v473_v54, %v471_v50 }
 0x15a   :  { %v1212_v62 = vpack.c.bf16 %v496_v58, %v3299_v39 }
 0x15b   :  { %1146 = vmatpush1.bf16.msra.mxu1 %v2640_v53  ;;  %v1213_v48 = vpack.c.bf16 %v497_v59, %v3301_v9 }
 0x15c   :  { %1147 = vmatprep.subr.bf16.mxu1 %v2697_v1 }
 0x15e   :  { %846 = vmatmul.mubr.bf16.gmra.mrb[24].mxu1 %v3167_v47  ;;  %1355 = vmatmul.mubr.bf16.gmra.mrb[68].mxu0 %v3221_v36  ;;  %v2644_v47 = vld [vmem:[%s3605_s3 + $0x158] sm:$0xff]  }
 0x15f   :  { %1148 = vmatpush1.bf16.msra.mxu1 %v2641_v55  ;;  %2164 = vmatprep.mubr.msk.bf16.mxu1 %vm635_vm2, %v3223_v37  ;;  %v2645_v37 = vld [vmem:[%s3605_s3 + $0x160] sm:$0xff]  }
 0x160   :  { %2283 = vmatprep.mubr.msk.bf16.mxu0 %vm635_vm2, %v863_v24  ;;  %1149 = vmatprep.subr.bf16.mxu1 %v2697_v1 }
 0x163   :  { %1150 = vmatpush1.bf16.msra.mxu1 %v2642_v56 }
 0x164   :  { %1151 = vmatprep.subr.bf16.mxu1 %v2697_v1 }
 0x166   :  { %854 = vmatmul.mubr.bf16.gmra.mrb[28].mxu1 %v3221_v36  ;;  %1363 = vmatmul.mubr.bf16.gmra.mrb[72].mxu0 %v3276_v19  ;;  %v2647_v36 = vld [vmem:[%s3605_s3 + $0x170] sm:$0xff]  }
 0x167   :  { %1152 = vmatpush1.bf16.msra.mxu1 %v2643_v57  ;;  %2241 = vmatprep.mubr.msk.bf16.mxu1 %vm635_vm2, %v3142_v27  ;;  %v2646_v27 = vld [vmem:[%s3605_s3 + $0x168] sm:$0xff]  }
 0x168   :  { %1153 = vmatprep.subr.bf16.mxu1 %v2697_v1  ;;  %2284 = vmatprep.mubr.msk.bf16.mxu0 %vm635_vm2, %v1213_v48 }
 0x16b   :  { %1154 = vmatpush1.bf16.msra.mxu1 %v2644_v47 }
 0x16c   :  { %1155 = vmatprep.subr.bf16.mxu1 %v2697_v1 }
 0x16e   :  { %1371 = vmatmul.mubr.bf16.gmra.mrb[76].mxu0 %v1212_v62 }
 0x16f   :  { %1156 = vmatpush1.bf16.msra.mxu1 %v2645_v37 }
 0x170   :  { %1157 = vmatprep.subr.bf16.mxu1 %v2697_v1 }
 0x173   :  { %1158 = vmatpush1.bf16.msra.mxu1 %v2646_v27 }
 0x174   :  { %1159 = vmatprep.subr.bf16.mxu1 %v2697_v1 }
 0x177   :  { %1160 = vmatpush1.bf16.msra.mxu1 %v2647_v36 }
 0x178   :  { %1161 = vmatprep.subr.bf16.mxu1 %v2697_v1  ;;  %v2698_v1 = vmov 0.0  }
 0x179   :  { %2479 = vmatprep.subr.bf16.mxu0 %v2698_v1  ;;  %2495 = vmatprep.mubr.msk.bf16.mxu0 %vm2699_vm3, %v2698_v1 }
 0x17b   :  { %1162 = vmatpush1.bf16.msra.mxu1 %v2648_v63 }
 0x17c   :  { %2439 = vmatprep.subr.bf16.mxu1 %v2698_v1 }
 0x17e   :  { %1172 = vmatmul.mubr.bf16.vlgmr.msra.gmra.mrb[32].mxu1 %v3140_v25  ;;  %v2649_v25 = vld [vmem:[%s3607_s5 + $0x40] sm:$0xff]  }
 0x17f   :  { %2242 = vmatprep.mubr.msk.bf16.mxu1 %vm635_vm2, %v3196_v11  ;;  %2440 = vmatpush3.bf16.msra.mxu1 %v2649_v25  ;;  %v2651_v11 = vld [vmem:[%s3607_s5 + $0x50] sm:$0xff]  }
 0x180   :  { %2441 = vmatprep.subr.bf16.mxu1 %v2698_v1 }
 0x186   :  { %1180 = vmatmul.mubr.bf16.gmra.mrb[36].mxu1 %v3194_v8  ;;  %v2650_v8 = vld [vmem:[%s3607_s5 + $0x48] sm:$0xff]  }
 0x187   :  { %2243 = vmatprep.mubr.msk.bf16.mxu1 %vm635_vm2, %v3250_v61  ;;  %2442 = vmatpush3.bf16.msra.mxu1 %v2650_v8  ;;  %v2653_v61 = vld [vmem:[%s3607_s5 + $0x58] sm:$0xff]  }
 0x188   :  { %2443 = vmatprep.subr.bf16.mxu1 %v2698_v1 }
 0x18b   :  { %2444 = vmatpush3.bf16.msra.mxu1 %v2651_v11 }
 0x18c   :  { %2445 = vmatprep.subr.bf16.mxu1 %v2698_v1 }
 0x18e   :  { %1188 = vmatmul.mubr.bf16.gmra.mrb[40].mxu1 %v3248_v60  ;;  %v2652_v60 = vld [vmem:[%s3607_s5 + $0x80] sm:$0xff]  }
 0x18f   :  { %2244 = vmatprep.mubr.msk.bf16.mxu1 %vm635_vm2, %v1038_v42  ;;  %2480 = vmatpush3.bf16.msra.mxu0 %v2652_v60 }
 0x190   :  { %2481 = vmatprep.subr.bf16.mxu0 %v2698_v1  ;;  %2446 = vmatpush3.bf16.msra.mxu1 %v2653_v61 }
 0x191   :  { %2447 = vmatprep.subr.bf16.mxu1 %v2698_v1 }
 0x193   :  { %2482 = vmatpush3.bf16.msra.mxu0 %v2654_v0 }
 0x194   :  { %2483 = vmatprep.subr.bf16.mxu0 %v2698_v1  ;;  %2448 = vmatpush3.bf16.msra.mxu1 %v2655_v3 }
 0x195   :  { %2449 = vmatprep.subr.bf16.mxu1 %v2698_v1 }
 0x196   :  { %1196 = vmatmul.mubr.bf16.gmra.mrb[44].mxu1 %v1037_v2 }
 0x197   :  { %2484 = vmatpush3.bf16.msra.mxu0 %v2656_v4  ;;  %2455 = vmatprep.mubr.msk.bf16.mxu1 %vm2699_vm3, %v2698_v1 }
 0x198   :  { %2485 = vmatprep.subr.bf16.mxu0 %v2698_v1  ;;  %2450 = vmatpush3.bf16.msra.mxu1 %v2657_v5 }
 0x199   :  { %2451 = vmatprep.subr.bf16.mxu1 %v2698_v1 }
 0x19b   :  { %2486 = vmatpush3.bf16.msra.mxu0 %v2658_v6 }
 0x19c   :  { %2487 = vmatprep.subr.bf16.mxu0 %v2698_v1  ;;  %2452 = vmatpush3.bf16.msra.mxu1 %v2659_v7 }
 0x19d   :  { %2453 = vmatprep.subr.bf16.mxu1 %v2698_v1 }
 0x19f   :  { %2488 = vmatpush3.bf16.msra.mxu0 %v2660_v12 }
 0x1a0   :  { %2489 = vmatprep.subr.bf16.mxu0 %v2698_v1  ;;  %2454 = vmatpush3.bf16.msra.mxu1 %v2661_v13 }
 0x1a1   :  { %2459 = vmatprep.subr.bf16.mxu1 %v2698_v1 }
 0x1a3   :  { %2490 = vmatpush3.bf16.msra.mxu0 %v2662_v14 }
 0x1a4   :  { %2491 = vmatprep.subr.bf16.mxu0 %v2698_v1 }
 0x1a7   :  { %2492 = vmatpush3.bf16.msra.mxu0 %v2664_v15 }
 0x1a8   :  { %2493 = vmatprep.subr.bf16.mxu0 %v2698_v1 }
 0x1ab   :  { %2494 = vmatpush3.bf16.msra.mxu0 %v2666_v20 }
 0x1ac   :  { %2519 = vmatprep.subr.bf16.mxu0 %v2698_v1 }
 0x1e9   :  { %v682_v16 = vpop.f32.mrb[0].mxu1 }
 0x1ea   :  { %v684_v17 = vpop.f32.mrb[1].mxu1 }
 0x1eb   :  { %v685_v18 = vpop.f32.mrb[2].mxu1 }
 0x1ec   :  { %v687_v19 = vpop.f32.mrb[3].mxu1 }
 0x1f1   :  { %v998_v10 = vpop.f32.mrb[48].mxu0 }
 0x1f2   :  { %v1000_v24 = vpop.f32.mrb[49].mxu0 }
 0x1f3   :  { %v1001_v29 = vpop.f32.mrb[50].mxu0 }
 0x1f4   :  { %v1003_v21 = vpop.f32.mrb[51].mxu0 }
 0x1f9   :  { %v690_v22 = vpop.f32.mrb[4].mxu1 }
 0x1fa   :  { %v692_v28 = vpop.f32.mrb[5].mxu1 }
 0x1fb   :  { %v693_v30 = vpop.f32.mrb[6].mxu1 }
 0x1fc   :  { %v695_v31 = vpop.f32.mrb[7].mxu1 }
 0x201   :  { %v1006_v32 = vpop.f32.mrb[52].mxu0 }
 0x202   :  { %v1008_v33 = vpop.f32.mrb[53].mxu0 }
 0x203   :  { %v1009_v34 = vpop.f32.mrb[54].mxu0 }
 0x204   :  { %v1011_v35 = vpop.f32.mrb[55].mxu0 }
 0x209   :  { %v698_v38 = vpop.f32.mrb[8].mxu1 }
 0x20a   :  { %v700_v39 = vpop.f32.mrb[9].mxu1 }
 0x20b   :  { %v701_v9 = vpop.f32.mrb[10].mxu1 }
 0x20c   :  { %v703_v23 = vpop.f32.mrb[11].mxu1 }
 0x211   :  { %v1014_v26 = vpop.f32.mrb[56].mxu0 }
 0x212   :  { %v1016_v40 = vpop.f32.mrb[57].mxu0 }
 0x213   :  { %v1017_v2 = vpop.f32.mrb[58].mxu0 }
 0x214   :  { %v1019_v41 = vpop.f32.mrb[59].mxu0 }
 0x219   :  { %v706_v42 = vpop.f32.mrb[12].mxu1 }
 0x21a   :  { %v708_v43 = vpop.f32.mrb[13].mxu1 }
 0x21b   :  { %v709_v44 = vpop.f32.mrb[14].mxu1 }
 0x21c   :  { %v711_v45 = vpop.f32.mrb[15].mxu1 }
 0x221   :  { %v831_v46 = vpop.f32.mrb[16].mxu1  ;;  %v1022_v49 = vpop.f32.mrb[60].mxu0 }
 0x222   :  { %v832_v50 = vadd.f32 %v831_v46, %v682_v16  ;;  %v833_v51 = vpop.f32.mrb[17].mxu1  ;;  %v1024_v52 = vpop.f32.mrb[61].mxu0 }
 0x223   :  { %v834_v53 = vpop.f32.mrb[18].mxu1  ;;  %v1025_v54 = vpop.f32.mrb[62].mxu0 }
 0x224   :  { %v835_v58 = vadd.f32 %v834_v53, %v685_v18  ;;  %v836_v59 = vpop.f32.mrb[19].mxu1  ;;  %v1027_v62 = vpop.f32.mrb[63].mxu0  ;;  %v1029_v55 = vadd.f32 %v998_v10, %v832_v50 }
 0x226   :  { %v1030_v48 = vadd.f32 %v1001_v29, %v835_v58 }
 0x229   :  { %v839_v56 = vpop.f32.mrb[20].mxu1  ;;  %v1348_v57 = vpop.f32.mrb[64].mxu0 }
 0x22a   :  { %v840_v47 = vadd.f32 %v839_v56, %v690_v22  ;;  %v841_v37 = vpop.f32.mrb[21].mxu1  ;;  %v1350_v27 = vpop.f32.mrb[65].mxu0 }
 0x22b   :  { %v842_v36 = vpop.f32.mrb[22].mxu1  ;;  %v1351_v63 = vpop.f32.mrb[66].mxu0 }
 0x22c   :  { %v843_v25 = vadd.f32 %v842_v36, %v693_v30  ;;  %v844_v8 = vpop.f32.mrb[23].mxu1  ;;  %v1353_v11 = vpop.f32.mrb[67].mxu0  ;;  %v1031_v60 = vadd.f32 %v1006_v32, %v840_v47 }
 0x22e   :  { %v1032_v61 = vadd.f32 %v1009_v34, %v843_v25 }
 0x231   :  { %v847_v0 = vpop.f32.mrb[24].mxu1  ;;  %v1356_v3 = vpop.f32.mrb[68].mxu0 }
 0x232   :  { %v848_v4 = vadd.f32 %v847_v0, %v698_v38  ;;  %v849_v5 = vpop.f32.mrb[25].mxu1  ;;  %v1358_v6 = vpop.f32.mrb[69].mxu0  ;;  %v2663_v0 = vld [vmem:[%s3607_s5] sm:$0xff]  }
 0x233   :  { %v850_v7 = vpop.f32.mrb[26].mxu1  ;;  %v1359_v12 = vpop.f32.mrb[70].mxu0 }
 0x234   :  { %v851_v13 = vadd.f32 %v850_v7, %v701_v9  ;;  %v852_v14 = vpop.f32.mrb[27].mxu1  ;;  %v1361_v15 = vpop.f32.mrb[71].mxu0  ;;  %v1033_v16 = vadd.f32 %v1014_v26, %v848_v4  ;;  %v2285_v26 = vld [vmem:[%s3608_s4] ss:$0 sm:$0xff]  ;;  %v2665_v7 = vld [vmem:[%s3607_s5 + $0x8] sm:$0xff]  }
 0x236   :  { %v1034_v17 = vadd.f32 %v1017_v2, %v851_v13 }
 0x239   :  { %v855_v18 = vpop.f32.mrb[28].mxu1  ;;  %v1364_v19 = vpop.f32.mrb[72].mxu0 }
 0x23a   :  { %v856_v20 = vadd.f32 %v855_v18, %v706_v42  ;;  %v857_v10 = vpop.f32.mrb[29].mxu1  ;;  %v1366_v24 = vpop.f32.mrb[73].mxu0 }
 0x23b   :  { %v858_v29 = vpop.f32.mrb[30].mxu1  ;;  %v1367_v21 = vpop.f32.mrb[74].mxu0  ;;  %v2667_v10 = vld [vmem:[%s3607_s5 + $0x10] sm:$0xff]  }
 0x23c   :  { %v859_v22 = vadd.f32 %v858_v29, %v709_v44  ;;  %v860_v28 = vpop.f32.mrb[31].mxu1  ;;  %v1369_v30 = vpop.f32.mrb[75].mxu0  ;;  %v1035_v31 = vadd.f32 %v1022_v49, %v856_v20 }
 0x23d   :  { %v2668_v28 = vld [vmem:[%s3607_s5 + $0x18] sm:$0xff]  }
 0x23e   :  { %v1036_v32 = vadd.f32 %v1025_v54, %v859_v22 }
 0x241   :  { %v1372_v33 = vpop.f32.mrb[76].mxu0 }
 0x242   :  { %v1374_v34 = vpop.f32.mrb[77].mxu0 }
 0x243   :  { %v1375_v35 = vpop.f32.mrb[78].mxu0  ;;  %v2670_v34 = vld [vmem:[%s3607_s5 + $0x28] sm:$0xff]  }
 0x244   :  { %v1377_v38 = vpop.f32.mrb[79].mxu0 }
 0x245   :  { %v2672_v38 = vld [vmem:[%s3607_s5 + $0x38] sm:$0xff]  }
 0x251   :  { %v1173_v39 = vpop.f32.mrb[32].mxu1 }
 0x252   :  { %v1204_v9 = vadd.f32 %v1173_v39, %v1029_v55  ;;  %v1175_v23 = vpop.f32.mrb[33].mxu1  ;;  %v2673_v39 = vld [vmem:[%s3607_s5 + $0xc0] sm:$0xff]  }
 0x253   :  { %v1176_v40 = vpop.f32.mrb[34].mxu1  ;;  %v2674_v23 = vld [vmem:[%s3607_s5 + $0xc8] sm:$0xff]  }
 0x254   :  { %v1379_v2 = vadd.f32 %v1348_v57, %v1204_v9  ;;  %v1205_v41 = vadd.f32 %v1176_v40, %v1030_v48  ;;  %v1178_v42 = vpop.f32.mrb[35].mxu1  ;;  %v2676_v40 = vld [vmem:[%s3607_s5 + $0xd8] sm:$0xff]  }
 0x255   :  { %v2679_v42 = vld [vmem:[%s3607_s5 + $0xf0] sm:$0xff]  }
 0x256   :  { %v1394_v43 = vadd.f32 %v2285_v26, %v1379_v2  ;;  %v1380_v44 = vadd.f32 %v1351_v63, %v1205_v41  ;;  %v2677_v2 = vld [vmem:[%s3607_s5 + $0xe0] sm:$0xff]   ;;  %v2678_v41 = vld [vmem:[%s3607_s5 + $0xe8] sm:$0xff]  }
 0x258   :  { %v1395_v45 = vadd.f32 %v2285_v26, %v1380_v44  ;;  %v1402_v49 = vmax.f32 %v1394_v43, 0.0  ;;  %v2680_v43 = vld [vmem:[%s3607_s5 + $0xf8] sm:$0xff]  }
 0x259   :  { %v1181_v46 = vpop.f32.mrb[36].mxu1 }
 0x25a   :  { %v1403_v50 = vmax.f32 %v1395_v45, 0.0  ;;  %v1206_v51 = vadd.f32 %v1181_v46, %v1031_v60  ;;  %v1183_v52 = vpop.f32.mrb[37].mxu1  ;;  %v2681_v45 = vld [vmem:[%s3609_s7] sm:$0xff]   ;;  %v2682_v46 = vld [vmem:[%s3609_s7 + $0x8] sm:$0xff]  }
 0x25b   :  { %v1184_v53 = vpop.f32.mrb[38].mxu1  ;;  %v2686_v52 = vld [vmem:[%s3609_s7 + $0x28] sm:$0xff]  }
 0x25c   :  { %v3453_v54 = vadd.f32 %v1403_v50, %v1402_v49  ;;  %v1381_v58 = vadd.f32 %v1356_v3, %v1206_v51  ;;  %v1207_v59 = vadd.f32 %v1184_v53, %v1032_v61  ;;  %v1186_v62 = vpop.f32.mrb[39].mxu1  ;;  %v2683_v49 = vld [vmem:[%s3609_s7 + $0x10] sm:$0xff]   ;;  %v2684_v50 = vld [vmem:[%s3609_s7 + $0x18] sm:$0xff]   ;;  %v2685_v51 = vld [vmem:[%s3609_s7 + $0x20] sm:$0xff]  }
 0x25d   :  { %v2687_v53 = vld [vmem:[%s3609_s7 + $0x30] sm:$0xff]  }
 0x25e   :  { %v1396_v55 = vadd.f32 %v2285_v26, %v1381_v58  ;;  %v1382_v56 = vadd.f32 %v1359_v12, %v1207_v59  ;;  %v1414_v9 = vpack.c.bf16 %v3453_v54, %v3453_v54  ;;  %v2688_v54 = vld [vmem:[%s3609_s7 + $0x38] sm:$0xff]   ;;  %v2689_v58 = vld [vmem:[%s3610_s9] sm:$0xff]   ;;  %v2690_v59 = vld [vmem:[%s3610_s9 + $0x8] sm:$0xff]  }
 0x25f   :  { %v2691_v62 = vld [vmem:[%s3610_s9 + $0x10] sm:$0xff]  }
 0x260   :  { %v1397_v47 = vadd.f32 %v2285_v26, %v1382_v56  ;;  %v1404_v48 = vmax.f32 %v1396_v55, 0.0  ;;  %v2692_v55 = vld [vmem:[%s3610_s9 + $0x18] sm:$0xff]   ;;  %v2693_v56 = vld [vmem:[%s3610_s9 + $0x20] sm:$0xff]  }
 0x261   :  { %v1189_v57 = vpop.f32.mrb[40].mxu1 }
 0x262   :  { %v1405_v37 = vmax.f32 %v1397_v47, 0.0  ;;  %v1208_v27 = vadd.f32 %v1189_v57, %v1033_v16  ;;  %v1191_v36 = vpop.f32.mrb[41].mxu1  ;;  %v2694_v47 = vld [vmem:[%s3610_s9 + $0x28] sm:$0xff]  }
 0x263   :  { %v1192_v63 = vpop.f32.mrb[42].mxu1 }
 0x264   :  { %v1411_v25 = vadd.f32 %v1405_v37, %v1404_v48  ;;  %v1383_v8 = vadd.f32 %v1364_v19, %v1208_v27  ;;  %v1209_v11 = vadd.f32 %v1192_v63, %v1034_v17  ;;  %v1194_v60 = vpop.f32.mrb[43].mxu1 }
 0x266   :  { %v1431_v3 = vpack.c.bf16 %v1411_v25, %v1411_v25  ;;  %v1398_v61 = vadd.f32 %v2285_v26, %v1383_v8  ;;  %v1384_v4 = vadd.f32 %v1367_v21, %v1209_v11 }
 0x268   :  { %v1399_v5 = vadd.f32 %v2285_v26, %v1384_v4  ;;  %2456 = vmatmul.mubr.bf16.vlgmr.msra.gmra.mrb[48].mxu1 %v1431_v3  ;;  %v1406_v12 = vmax.f32 %v1398_v61, 0.0 }
 0x269   :  { %2460 = vmatpush3.bf16.msra.mxu1 %v2663_v0  ;;  %v1197_v6 = vpop.f32.mrb[44].mxu1  ;;  %2475 = vmatprep.mubr.msk.bf16.mxu1 %vm2699_vm3, %v2698_v1 }
 0x26a   :  { %v1407_v13 = vmax.f32 %v1399_v5, 0.0  ;;  %v1210_v14 = vadd.f32 %v1197_v6, %v1035_v31  ;;  %v1199_v15 = vpop.f32.mrb[45].mxu1  ;;  %2461 = vmatprep.subr.bf16.mxu1 %v2698_v1  ;;  %v2366_v6 = vld [vmem:[%s3611_s6] ss:$0 sm:$0xff] }
 0x26b   :  { %v1200_v16 = vpop.f32.mrb[46].mxu1 }
 0x26c   :  { %v1412_v17 = vadd.f32 %v1407_v13, %v1406_v12  ;;  %v1211_v18 = vadd.f32 %v1200_v16, %v1036_v32  ;;  %v1385_v19 = vadd.f32 %v1372_v33, %v1210_v14  ;;  %v1202_v20 = vpop.f32.mrb[47].mxu1  ;;  %v2669_v33 = vld [vmem:[%s3607_s5 + $0x20] sm:$0xff]  }
 0x26d   :  { %2462 = vmatpush3.bf16.msra.mxu1 %v2665_v7  ;;  %v2367_v20 = vld [vmem:[%s3612_s8] ss:$0 sm:$0xff] }
 0x26e   :  { %v1625_v24 = vpack.c.bf16 %v1412_v17, %v1412_v17  ;;  %v1400_v29 = vadd.f32 %v2285_v26, %v1385_v19  ;;  %v1386_v21 = vadd.f32 %v1375_v35, %v1211_v18  ;;  %2463 = vmatprep.subr.bf16.mxu1 %v2698_v1  ;;  %v2671_v35 = vld [vmem:[%s3607_s5 + $0x30] sm:$0xff]   ;;  %v2696_v19 = vld [vmem:[%s3610_s9 + $0x38] sm:$0xff]  }
 0x26f   :  { %v2695_v18 = vld [vmem:[%s3610_s9 + $0x30] sm:$0xff]  }
 0x270   :  { %v1401_v22 = vadd.f32 %v2285_v26, %v1386_v21  ;;  %2496 = vmatmul.mubr.bf16.vlgmr.msra.gmra.mrb[80].mxu0 %v1625_v24  ;;  %v1408_v30 = vmax.f32 %v1400_v29, 0.0  ;;  %v2675_v26 = vld [vmem:[%s3607_s5 + $0xd0] sm:$0xff]  }
 0x271   :  { %2464 = vmatpush3.bf16.msra.mxu1 %v2667_v10  ;;  %2535 = vmatprep.mubr.msk.bf16.mxu0 %vm2699_vm3, %v2698_v1 }
 0x272   :  { %v1409_v31 = vmax.f32 %v1401_v22, 0.0  ;;  %2465 = vmatprep.subr.bf16.mxu1 %v2698_v1  ;;  %2520 = vmatpush3.bf16.msra.mxu0 %v2681_v45 }
 0x273   :  { %2521 = vmatprep.subr.bf16.mxu0 %v2698_v1 }
 0x274   :  { %v1413_v32 = vadd.f32 %v1409_v31, %v1408_v30 }
 0x275   :  { %2466 = vmatpush3.bf16.msra.mxu1 %v2668_v28 }
 0x276   :  { %2467 = vmatprep.subr.bf16.mxu1 %v2698_v1  ;;  %v1732_v44 = vpack.c.bf16 %v1413_v32, %v1413_v32  ;;  %2522 = vmatpush3.bf16.msra.mxu0 %v2682_v46 }
 0x277   :  { %2523 = vmatprep.subr.bf16.mxu0 %v2698_v1 }
 0x279   :  { %2468 = vmatpush3.bf16.msra.mxu1 %v2669_v33 }
 0x27a   :  { %2469 = vmatprep.subr.bf16.mxu1 %v2698_v1  ;;  %2524 = vmatpush3.bf16.msra.mxu0 %v2683_v49 }
 0x27b   :  { %2525 = vmatprep.subr.bf16.mxu0 %v2698_v1 }
 0x27d   :  { %2470 = vmatpush3.bf16.msra.mxu1 %v2670_v34 }
 0x27e   :  { %2471 = vmatprep.subr.bf16.mxu1 %v2698_v1  ;;  %2526 = vmatpush3.bf16.msra.mxu0 %v2684_v50 }
 0x27f   :  { %2527 = vmatprep.subr.bf16.mxu0 %v2698_v1 }
 0x281   :  { %2472 = vmatpush3.bf16.msra.mxu1 %v2671_v35 }
 0x282   :  { %2473 = vmatprep.subr.bf16.mxu1 %v2698_v1  ;;  %2528 = vmatpush3.bf16.msra.mxu0 %v2685_v51 }
 0x283   :  { %2529 = vmatprep.subr.bf16.mxu0 %v2698_v1 }
 0x285   :  { %2474 = vmatpush3.bf16.msra.mxu1 %v2672_v38 }
 0x286   :  { %2499 = vmatprep.subr.bf16.mxu1 %v2698_v1  ;;  %2530 = vmatpush3.bf16.msra.mxu0 %v2686_v52 }
 0x287   :  { %2531 = vmatprep.subr.bf16.mxu0 %v2698_v1 }
 0x288   :  { %2476 = vmatmul.mubr.bf16.vlgmr.msra.gmra.mrb[52].mxu1 %v1414_v9 }
 0x289   :  { %2500 = vmatpush3.bf16.msra.mxu1 %v2673_v39  ;;  %2515 = vmatprep.mubr.msk.bf16.mxu1 %vm2699_vm3, %v2698_v1 }
 0x28a   :  { %2501 = vmatprep.subr.bf16.mxu1 %v2698_v1  ;;  %2532 = vmatpush3.bf16.msra.mxu0 %v2687_v53 }
 0x28b   :  { %2533 = vmatprep.subr.bf16.mxu0 %v2698_v1 }
 0x28d   :  { %2502 = vmatpush3.bf16.msra.mxu1 %v2674_v23 }
 0x28e   :  { %2503 = vmatprep.subr.bf16.mxu1 %v2698_v1  ;;  %2534 = vmatpush3.bf16.msra.mxu0 %v2688_v54 }
 0x291   :  { %2504 = vmatpush3.bf16.msra.mxu1 %v2675_v26 }
 0x292   :  { %2505 = vmatprep.subr.bf16.mxu1 %v2698_v1 }
 0x295   :  { %2506 = vmatpush3.bf16.msra.mxu1 %v2676_v40 }
 0x296   :  { %2507 = vmatprep.subr.bf16.mxu1 %v2698_v1 }
 0x299   :  { %2508 = vmatpush3.bf16.msra.mxu1 %v2677_v2 }
 0x29a   :  { %2509 = vmatprep.subr.bf16.mxu1 %v2698_v1 }
 0x29d   :  { %2510 = vmatpush3.bf16.msra.mxu1 %v2678_v41 }
 0x29e   :  { %2511 = vmatprep.subr.bf16.mxu1 %v2698_v1 }
 0x2a1   :  { %2512 = vmatpush3.bf16.msra.mxu1 %v2679_v42 }
 0x2a2   :  { %2513 = vmatprep.subr.bf16.mxu1 %v2698_v1 }
 0x2a5   :  { %2514 = vmatpush3.bf16.msra.mxu1 %v2680_v43 }
 0x2a6   :  { %2539 = vmatprep.subr.bf16.mxu1 %v2698_v1 }
 0x2a8   :  { %2516 = vmatmul.mubr.bf16.vlgmr.msra.gmra.mrb[56].mxu1 %v1732_v44 }
 0x2a9   :  { %2555 = vmatprep.mubr.msk.bf16.mxu1 %vm2699_vm3, %v2698_v1  ;;  %2540 = vmatpush3.bf16.msra.mxu1 %v2689_v58 }
 0x2aa   :  { %2541 = vmatprep.subr.bf16.mxu1 %v2698_v1 }
 0x2ad   :  { %2542 = vmatpush3.bf16.msra.mxu1 %v2690_v59 }
 0x2ae   :  { %2543 = vmatprep.subr.bf16.mxu1 %v2698_v1 }
 0x2b1   :  { %2544 = vmatpush3.bf16.msra.mxu1 %v2691_v62 }
 0x2b2   :  { %2545 = vmatprep.subr.bf16.mxu1 %v2698_v1 }
 0x2b5   :  { %2546 = vmatpush3.bf16.msra.mxu1 %v2692_v55 }
 0x2b6   :  { %2547 = vmatprep.subr.bf16.mxu1 %v2698_v1 }
 0x2b9   :  { %2548 = vmatpush3.bf16.msra.mxu1 %v2693_v56 }
 0x2ba   :  { %2549 = vmatprep.subr.bf16.mxu1 %v2698_v1 }
 0x2bd   :  { %2550 = vmatpush3.bf16.msra.mxu1 %v2694_v47 }
 0x2be   :  { %2551 = vmatprep.subr.bf16.mxu1 %v2698_v1 }
 0x2c1   :  { %2552 = vmatpush3.bf16.msra.mxu1 %v2695_v18 }
 0x2c2   :  { %2553 = vmatprep.subr.bf16.mxu1 %v2698_v1  ;;  %v2376_v1 = vld [vmem:[%s3613_s10] ss:$0 sm:$0xff] }
 0x2c5   :  { %2554 = vmatpush3.bf16.msra.mxu1 %v2696_v19 }
 0x33b   :  { %v1531_v57 = vpop.f32.mrb[48].mxu1 }
 0x33c   :  { %v2457_v48 = vpop.f32.mrb[49].mxu1 }
 0x33d   :  { %v1534_v37 = vpop.f32.mrb[50].mxu1 }
 0x33e   :  { %v2458_v27 = vpop.f32.mrb[51].mxu1 }
 0x343   :  { %v1725_v36 = vpop.f32.mrb[80].mxu0 }
 0x344   :  { %v2497_v63 = vpop.f32.mrb[81].mxu0 }
 0x345   :  { %v1728_v25 = vpop.f32.mrb[82].mxu0 }
 0x346   :  { %v2498_v8 = vpop.f32.mrb[83].mxu0 }
 0x35b   :  { %v1619_v11 = vpop.f32.mrb[52].mxu1 }
 0x35c   :  { %v1620_v60 = vadd.f32 %v1619_v11, %v1531_v57  ;;  %v2477_v0 = vpop.f32.mrb[53].mxu1 }
 0x35d   :  { %v1622_v3 = vpop.f32.mrb[54].mxu1 }
 0x35e   :  { %v2478_v61 = vpop.f32.mrb[55].mxu1  ;;  %v1731_v4 = vadd.f32 %v1725_v36, %v1620_v60 }
 0x37b   :  { %v1832_v5 = vpop.f32.mrb[56].mxu1 }
 0x37c   :  { %v1838_v7 = vadd.f32 %v1832_v5, %v1731_v4  ;;  %v2517_v12 = vpop.f32.mrb[57].mxu1 }
 0x37d   :  { %v1835_v13 = vpop.f32.mrb[58].mxu1 }
 0x37e   :  { %v1846_v14 = vadd.f32 %v2366_v6, %v1838_v7  ;;  %v2518_v15 = vpop.f32.mrb[59].mxu1 }
 0x380   :  { %v1847_v16 = vmax.f32 %v1846_v14, 0.0 }
 0x382   :  { %v1848_v17 = vpack.c.bf16 %v1847_v16, %v1847_v16 }
 0x384   :  { %2536 = vmatmul.mubr.bf16.vlgmr.msra.gmra.mrb[84].mxu0 %v1848_v17 }
 0x457   :  { %v1954_v10 = vpop.f32.mrb[84].mxu0 }
 0x458   :  { %v1955_v24 = vadd.f32 %v2367_v20, %v1954_v10  ;;  %v2537_v29 = vpop.f32.mrb[85].mxu0 }
 0x459   :  { %v1957_v21 = vpop.f32.mrb[86].mxu0 }
 0x45a   :  { %v1960_v22 = vmax.f32 %v1955_v24, 0.0  ;;  %v2538_v28 = vpop.f32.mrb[87].mxu0 }
 0x45c   :  { %v1961_v30 = vpack.c.bf16 %v1960_v22, %v1960_v22 }
 0x45e   :  { %2556 = vmatmul.mubr.bf16.vlgmr.msra.gmra.mrb[60].mxu1 %v1961_v30 }
 0x531   :  { %v2067_v31 = vpop.f32.mrb[60].mxu1 }
 0x532   :  { %v2068_v32 = vadd.f32 %v2376_v1, %v2067_v31  ;;  %v2557_v33 = vpop.f32.mrb[61].mxu1 }
 0x533   :  { %v2070_v34 = vpop.f32.mrb[62].mxu1 }
 0x534   :  { %2073 = vst [vmem:[%s3614_s11] sm:$0xff] %v2068_v32  ;;  %v2558_v35 = vpop.f32.mrb[63].mxu1 }

</bundles_post_ra>
